<compile_context>
chip_gen: v5e
topology: v5e:2x2
jax: 0.10.0
libtpu: 0.0.40
codegen_flags: <defaults>
</compile_context>

<pallas_src>
import jax
import jax.numpy as jnp
import numpy as np
from jax.experimental import pallas as pl
from jax.experimental.pallas import tpu as pltpu


# ----------------------------------------------------------------------------
# Pallas kernel: G (batch*head) slices per grid step, lane-dense (N on lanes).
# ----------------------------------------------------------------------------
def _performer_kernel(q_ref, k_ref, v_ref, mrow_ref, mcol_ref, proj_ref, o_ref):
    G, D, N = q_ref.shape              # [G, D, N] blocks (N on the lane axis)
    M = proj_ref.shape[0]

    q = q_ref[...]                     # [G, D, N]
    k = k_ref[...] * mrow_ref[...]     # masked keys   (K * mask), lane-dense
    v = v_ref[...] * mcol_ref[...]     # masked values (V * mask), [G, N, D]
    proj = proj_ref[...]               # [M, D], data_normalizer already folded

    dn2 = jnp.float32(float(D) ** -0.5)    # data_normalizer ** 2
    ratio = jnp.float32(float(M) ** -0.5)
    eps = jnp.float32(1e-4)

    # --- softmax_kernel (FAVOR+): q and k fused along the lane axis ---------
    qk = jnp.concatenate([q, k], axis=-1)                        # [G, D, 2N]
    proj_b = jnp.broadcast_to(proj.astype(jnp.bfloat16)[None], (G, M, D))
    qk_dash = jnp.einsum('gmd,gdn->gmn', proj_b, qk.astype(jnp.bfloat16),
                         preferred_element_type=jnp.float32)     # [G, M, 2N]

    diag_qk = jnp.sum(qk * qk, axis=1, keepdims=True) * (0.5 * dn2)  # [G,1,2N]

    col_max = jnp.max(qk_dash, axis=1, keepdims=True)            # [G, 1, 2N]
    q_max = col_max[:, :, :N]                                    # per-query max
    # Per-head max over (features, seq) for keys.  performer-pytorch uses the
    # global max over the whole batch; the difference only enters through the
    # +eps term and is numerically negligible.
    k_max = jnp.max(col_max[:, :, N:], axis=-1, keepdims=True)   # [G, 1, 1]
    stab = jnp.concatenate([q_max, jnp.broadcast_to(k_max, (G, 1, N))],
                           axis=-1)                              # [G, 1, 2N]

    # One lane-dense f32 exp over the fused slab (bf16 exp possible on
    # v6e/v7x for extra EUP throughput; kept f32 for accuracy / v5e).
    qk_prime = ratio * (jnp.exp(qk_dash - diag_qk - stab) + eps)  # [G, M, 2N]
    q_prime = qk_prime[:, :, :N]
    k_prime = qk_prime[:, :, N:]

    # --- linear_attention, denominator folded into the output matmul --------
    k_cumsum = jnp.sum(k_prime, axis=-1, keepdims=True)           # [G, M, 1]
    context = jnp.einsum('gmn,gnd->gmd', k_prime.astype(jnp.bfloat16),
                         v.astype(jnp.bfloat16),
                         preferred_element_type=jnp.float32)      # [G, M, D]
    context_ext = jnp.concatenate([context, k_cumsum], axis=-1)   # [G, M, D+1]

    out_ext = jnp.einsum('gmd,gmn->gdn', context_ext.astype(jnp.bfloat16),
                         q_prime.astype(jnp.bfloat16),
                         preferred_element_type=jnp.float32)      # [G, D+1, N]

    num = out_ext[:, :D, :]                                       # [G, D, N]
    denom = out_ext[:, D:, :]                                     # [G, 1, N]
    d_inv = pl.reciprocal(denom, approx=True)                     # EUP slot
    d_inv = d_inv * (2.0 - denom * d_inv)                         # Newton step

    o_ref[...] = (num * d_inv).astype(o_ref.dtype)                # lane-dense


# ----------------------------------------------------------------------------
# VMEM-budget-aware head batching
# ----------------------------------------------------------------------------
def _vmem_bytes_per_step(G, N, D, M):
    f32, bf16 = 4, 2
    io = 2 * (4 * G * D * N + 2 * G * N) * f32          # double-buffered blocks
    qk = G * D * 2 * N * (f32 + bf16)                    # fused q/k (+ bf16 cast)
    big = G * M * 2 * N * 2 * (f32 + bf16)               # qk_dash, qk_prime (+copies)
    tail = G * ((M * (D + 1)) + ((D + 1) * N)) * 2 * f32
    return io + qk + big + tail + M * D * f32


def _pick_heads_per_step(BH, N, D, M, heads_per_step, budget_bytes):
    if heads_per_step is not None:
        assert BH % heads_per_step == 0, "heads_per_step must divide B*H"
        return heads_per_step
    divisors = [g for g in range(1, BH + 1) if BH % g == 0]
    fits = [g for g in divisors if _vmem_bytes_per_step(g, N, D, M) <= budget_bytes]
    if not fits:
        fits = [1]
    # Prefer >= 2 grid steps (keep both v7x TensorCores busy), ideally an even
    # count, then take the largest G that fits (amortize per-step overhead).
    even = [g for g in fits if BH // g >= 2 and (BH // g) % 2 == 0]
    multi = [g for g in fits if BH // g >= 2]
    pool = even or multi or fits
    return max(pool)


# ----------------------------------------------------------------------------
# Wrapper
# ----------------------------------------------------------------------------
def performer_self_attention(Q, K, V, mask, projection_matrix,
                             heads_per_step=None,
                             vmem_budget_bytes=40 * 1024 * 1024):
    """Q, K, V: [B, H, N, D] float32; mask: [B, N] float32; proj: [M, D]."""
    B, H, N, D = Q.shape
    M = projection_matrix.shape[0]
    BH = B * H

    G = _pick_heads_per_step(BH, N, D, M, heads_per_step, vmem_budget_bytes)

    # Lane-dense layouts: Q/K as [BH, D, N] (sequence on the lane axis), V as
    # [BH, N, D] so the context matmul contracts over N in natural MXU form,
    # output produced as [BH, D, N] and transposed back outside the kernel.
    q_t = jnp.swapaxes(Q.reshape(BH, N, D), 1, 2)
    k_t = jnp.swapaxes(K.reshape(BH, N, D), 1, 2)
    v = V.reshape(BH, N, D)
    mask_bh = jnp.broadcast_to(mask[:, None, :], (B, H, N)).reshape(BH, N)
    mask_row = mask_bh[:, None, :]          # [BH, 1, N] for K
    mask_col = mask_bh[:, :, None]          # [BH, N, 1] for V

    # Pre-fold the FAVOR+ data_normalizer into the projection matrix.
    data_normalizer = float(D) ** -0.25
    proj_scaled = (data_normalizer * projection_matrix).astype(jnp.float32)

    dn_blk = pl.BlockSpec((G, D, N), lambda i: (i, 0, 0))
    out_t = pl.pallas_call(
        _performer_kernel,
        out_shape=jax.ShapeDtypeStruct((BH, D, N), Q.dtype),
        grid_spec=pltpu.PrefetchScalarGridSpec(
            num_scalar_prefetch=0,
            grid=(BH // G,),
            in_specs=[
                dn_blk,                                        # Q^T  [G, D, N]
                dn_blk,                                        # K^T  [G, D, N]
                pl.BlockSpec((G, N, D), lambda i: (i, 0, 0)),  # V    [G, N, D]
                pl.BlockSpec((G, 1, N), lambda i: (i, 0, 0)),  # mask (row)
                pl.BlockSpec((G, N, 1), lambda i: (i, 0, 0)),  # mask (col)
                pl.BlockSpec((M, D), lambda i: (0, 0)),        # scaled proj
            ],
            out_specs=dn_blk,
        ),
        compiler_params=pltpu.CompilerParams(
            dimension_semantics=("parallel",),
            # defaults are only 16 MiB (v5e) / 32 MiB (v6e, v7x); request more
            # headroom explicitly while staying under v7x's 64 MiB physical.
            vmem_limit_bytes=48 * 1024 * 1024),
    )(q_t, k_t, v, mask_row, mask_col, proj_scaled)

    return jnp.swapaxes(out_t, 1, 2).reshape(B, H, N, D)


# ----------------------------------------------------------------------------
# Deterministic parameter init: gaussian orthogonal random matrix (scaling=0)
# ----------------------------------------------------------------------------
def gaussian_orthogonal_random_matrix(key, nb_rows, nb_cols):
    nb_full_blocks = nb_rows // nb_cols
    keys = jax.random.split(key, nb_full_blocks + 2)
    blocks = []
    for i in range(nb_full_blocks):
        g = jax.random.normal(keys[i], (nb_cols, nb_cols), dtype=jnp.float32)
        qmat, _ = jnp.linalg.qr(g)
        blocks.append(qmat.T)
    rem = nb_rows - nb_full_blocks * nb_cols
    if rem > 0:
        g = jax.random.normal(keys[nb_full_blocks], (nb_cols, nb_cols),
                              dtype=jnp.float32)
        qmat, _ = jnp.linalg.qr(g)
        blocks.append(qmat.T[:rem])
    mat = jnp.concatenate(blocks, axis=0)
    # scaling == 0: multiply each row by the norm of a fresh gaussian row
    g = jax.random.normal(keys[-1], (nb_rows, nb_cols), dtype=jnp.float32)
    multiplier = jnp.linalg.norm(g, axis=-1)
    return multiplier[:, None] * mat


# ----------------------------------------------------------------------------
# Pure-JAX f32 reference (for correctness check)
# ----------------------------------------------------------------------------
def _reference(Q, K, V, mask, proj):
    K = K * mask[:, None, :, None]
    V = V * mask[:, None, :, None]
    d = Q.shape[-1]
    m = proj.shape[0]
    dn = d ** -0.25
    ratio = m ** -0.5
    eps = 1e-4

    def softmax_kernel(x, is_query):
        x_dash = jnp.einsum('bhnd,md->bhnm', dn * x, proj)
        diag = jnp.sum(x * x, axis=-1, keepdims=True) * 0.5 * dn * dn
        if is_query:
            mx = jnp.max(x_dash, axis=-1, keepdims=True)
        else:
            mx = jnp.max(x_dash, axis=(-1, -2), keepdims=True)
        return ratio * (jnp.exp(x_dash - diag - mx) + eps)

    qp = softmax_kernel(Q, True)
    kp = softmax_kernel(K, False)
    k_cumsum = kp.sum(axis=-2)
    d_inv = 1.0 / jnp.einsum('bhnm,bhm->bhn', qp, k_cumsum)
    context = jnp.einsum('bhnm,bhne->bhme', kp, V)
    return jnp.einsum('bhme,bhnm,bhn->bhne', context, qp, d_inv)


if __name__ == "__main__":
    # config: head_dim=8, rp_dim=32, kernel_type='exp', generalized_attention=False
    B, H, N, D, M = 2, 4, 128, 8, 32

    key = jax.random.PRNGKey(0)
    kq, kk, kv, km, kp = jax.random.split(key, 5)
    Q = jax.random.normal(kq, (B, H, N, D), dtype=jnp.float32)
    K = jax.random.normal(kk, (B, H, N, D), dtype=jnp.float32)
    V = jax.random.normal(kv, (B, H, N, D), dtype=jnp.float32)
    mask = jax.random.bernoulli(km, 0.8, (B, N)).astype(jnp.float32)
    proj = gaussian_orthogonal_random_matrix(kp, M, D)

    out = performer_self_attention(Q, K, V, mask, proj)
    out = jax.block_until_ready(out)

    ref = _reference(Q, K, V, mask, proj)
    # Tolerance reflects bf16 MXU operands (f32 accumulation) inside the
    # kernel vs. the pure-f32 reference; the denominator reciprocal itself is
    # refined with one Newton step so it is near f32-exact.
    np.testing.assert_allclose(np.asarray(out), np.asarray(ref),
                               rtol=2e-2, atol=2e-2)
    print("KERNEL_OK")
</pallas_src>

<mosaic_0001>
module attributes {stable_mosaic.version = 11 : i64} {
  func.func @_performer_kernel(%arg0: i32, %arg1: memref<4x8x128xf32, #tpu.memory_space<vmem>>, %arg2: memref<4x8x128xf32, #tpu.memory_space<vmem>>, %arg3: memref<4x128x8xf32, #tpu.memory_space<vmem>>, %arg4: memref<4x1x128xf32, #tpu.memory_space<vmem>>, %arg5: memref<4x128x1xf32, #tpu.memory_space<vmem>>, %arg6: memref<32x8xf32, #tpu.memory_space<vmem>>, %arg7: memref<4x8x128xf32, #tpu.memory_space<vmem>>) attributes {dimension_semantics = [#tpu.dimension_semantics<parallel>], iteration_bounds = array<i64: 2>, scalar_prefetch = 0 : i64, scratch_operands = 0 : i64, tpu.core_type = #tpu.core_type<tc>, window_params = [{transform_indices = @transform_0, window_bounds = array<i64: 4, 8, 128>}, {transform_indices = @transform_1, window_bounds = array<i64: 4, 8, 128>}, {transform_indices = @transform_2, window_bounds = array<i64: 4, 128, 8>}, {transform_indices = @transform_3, window_bounds = array<i64: 4, 1, 128>}, {transform_indices = @transform_4, window_bounds = array<i64: 4, 128, 1>}, {pipeline_mode = #tpu.pipeline_mode<synchronous>, transform_indices = @transform_5, window_bounds = array<i64: 32, 8>}, {transform_indices = @transform_6, window_bounds = array<i64: 4, 8, 128>}]} {
    %c0 = arith.constant 0 : index
    %c0_0 = arith.constant 0 : index
    %c0_1 = arith.constant 0 : index
    %0 = vector.load %arg1[%c0, %c0_0, %c0_1] : memref<4x8x128xf32, #tpu.memory_space<vmem>>, vector<4x8x128xf32>
    %c0_2 = arith.constant 0 : index
    %c0_3 = arith.constant 0 : index
    %c0_4 = arith.constant 0 : index
    %1 = vector.load %arg2[%c0_2, %c0_3, %c0_4] : memref<4x8x128xf32, #tpu.memory_space<vmem>>, vector<4x8x128xf32>
    %c0_5 = arith.constant 0 : index
    %c0_6 = arith.constant 0 : index
    %c0_7 = arith.constant 0 : index
    %2 = vector.load %arg4[%c0_5, %c0_6, %c0_7] : memref<4x1x128xf32, #tpu.memory_space<vmem>>, vector<4x1x128xf32>
    %3 = vector.broadcast %2 : vector<4x1x128xf32> to vector<4x8x128xf32>
    %4 = arith.mulf %1, %3 : vector<4x8x128xf32>
    %c0_8 = arith.constant 0 : index
    %c0_9 = arith.constant 0 : index
    %c0_10 = arith.constant 0 : index
    %5 = vector.load %arg3[%c0_8, %c0_9, %c0_10] : memref<4x128x8xf32, #tpu.memory_space<vmem>>, vector<4x128x8xf32>
    %c0_11 = arith.constant 0 : index
    %c0_12 = arith.constant 0 : index
    %c0_13 = arith.constant 0 : index
    %6 = vector.load %arg5[%c0_11, %c0_12, %c0_13] : memref<4x128x1xf32, #tpu.memory_space<vmem>>, vector<4x128x1xf32>
    %7 = vector.broadcast %6 : vector<4x128x1xf32> to vector<4x128x8xf32>
    %8 = arith.mulf %5, %7 : vector<4x128x8xf32>
    %c0_14 = arith.constant 0 : index
    %c0_15 = arith.constant 0 : index
    %9 = vector.load %arg6[%c0_14, %c0_15] : memref<32x8xf32, #tpu.memory_space<vmem>>, vector<32x8xf32>
    %10 = tpu.concatenate %0, %4 in 2 : vector<4x8x128xf32>, vector<4x8x128xf32> -> vector<4x8x256xf32>
    %11 = arith.truncf %9 : vector<32x8xf32> to vector<32x8xbf16>
    %12 = vector.shape_cast %11 : vector<32x8xbf16> to vector<1x32x8xbf16>
    %13 = vector.shape_cast %12 : vector<1x32x8xbf16> to vector<1x32x8xbf16>
    %14 = vector.broadcast %13 : vector<1x32x8xbf16> to vector<4x32x8xbf16>
    %15 = arith.truncf %10 : vector<4x8x256xf32> to vector<4x8x256xbf16>
    "tpu.trace_start"() <{level = 10 : i32, message = "gmd,gdn->gmn"}> : () -> ()
    %cst = arith.constant dense<0.000000e+00> : vector<4x32x256xf32>
    %16 = tpu.matmul %14, %15, %cst {dimension_numbers = #tpu.dot_dimension_numbers<[2], [1], [1], [2], [0, 0, 0, 1, 1, 2], [0], [0]>} : vector<4x32x8xbf16>, vector<4x8x256xbf16>, vector<4x32x256xf32> -> vector<4x32x256xf32>
    "tpu.trace_stop"() : () -> ()
    %17 = arith.mulf %10, %10 : vector<4x8x256xf32>
    %cst_16 = arith.constant dense<0.000000e+00> : vector<4x256xf32>
    %18 = vector.multi_reduction <add>, %17, %cst_16 [1] : vector<4x8x256xf32> to vector<4x256xf32>
    %19 = vector.shape_cast %18 : vector<4x256xf32> to vector<4x1x256xf32>
    %cst_17 = arith.constant 5.000000e-01 : f32
    %cst_18 = arith.constant 0.353553385 : f32
    %20 = arith.mulf %cst_17, %cst_18 : f32
    %21 = vector.broadcast %20 : f32 to vector<4x1x256xf32>
    %22 = arith.mulf %19, %21 : vector<4x1x256xf32>
    %cst_19 = arith.constant dense<0xFF800000> : vector<4x256xf32>
    %23 = vector.multi_reduction <maximumf>, %16, %cst_19 [1] : vector<4x32x256xf32> to vector<4x256xf32>
    %24 = vector.shape_cast %23 : vector<4x256xf32> to vector<4x1x256xf32>
    %25 = vector.extract_strided_slice %24 {offsets = [0, 0, 0], sizes = [4, 1, 128], strides = [1, 1, 1]} : vector<4x1x256xf32> to vector<4x1x128xf32>
    %26 = vector.extract_strided_slice %24 {offsets = [0, 0, 128], sizes = [4, 1, 128], strides = [1, 1, 1]} : vector<4x1x256xf32> to vector<4x1x128xf32>
    %cst_20 = arith.constant dense<0xFF800000> : vector<4x1xf32>
    %27 = vector.multi_reduction <maximumf>, %26, %cst_20 [2] : vector<4x1x128xf32> to vector<4x1xf32>
    %28 = vector.shape_cast %27 : vector<4x1xf32> to vector<4x1x1xf32>
    %29 = vector.shape_cast %28 : vector<4x1x1xf32> to vector<4x1x1xf32>
    %30 = vector.broadcast %29 : vector<4x1x1xf32> to vector<4x1x128xf32>
    %31 = tpu.concatenate %25, %30 in 2 : vector<4x1x128xf32>, vector<4x1x128xf32> -> vector<4x1x256xf32>
    %32 = vector.broadcast %22 : vector<4x1x256xf32> to vector<4x32x256xf32>
    %33 = arith.subf %16, %32 : vector<4x32x256xf32>
    %34 = vector.broadcast %31 : vector<4x1x256xf32> to vector<4x32x256xf32>
    %35 = arith.subf %33, %34 : vector<4x32x256xf32>
    %36 = math.exp %35 : vector<4x32x256xf32>
    %cst_21 = arith.constant 9.99999974E-5 : f32
    %37 = vector.broadcast %cst_21 : f32 to vector<4x32x256xf32>
    %38 = arith.addf %36, %37 : vector<4x32x256xf32>
    %cst_22 = arith.constant 0.176776692 : f32
    %39 = vector.broadcast %cst_22 : f32 to vector<4x32x256xf32>
    %40 = arith.mulf %39, %38 : vector<4x32x256xf32>
    %41 = vector.extract_strided_slice %40 {offsets = [0, 0, 0], sizes = [4, 32, 128], strides = [1, 1, 1]} : vector<4x32x256xf32> to vector<4x32x128xf32>
    %42 = vector.extract_strided_slice %40 {offsets = [0, 0, 128], sizes = [4, 32, 128], strides = [1, 1, 1]} : vector<4x32x256xf32> to vector<4x32x128xf32>
    %cst_23 = arith.constant dense<0.000000e+00> : vector<4x32xf32>
    %43 = vector.multi_reduction <add>, %42, %cst_23 [2] : vector<4x32x128xf32> to vector<4x32xf32>
    %44 = vector.shape_cast %43 : vector<4x32xf32> to vector<4x32x1xf32>
    %45 = arith.truncf %42 : vector<4x32x128xf32> to vector<4x32x128xbf16>
    %46 = arith.truncf %8 : vector<4x128x8xf32> to vector<4x128x8xbf16>
    "tpu.trace_start"() <{level = 10 : i32, message = "gmn,gnd->gmd"}> : () -> ()
    %cst_24 = arith.constant dense<0.000000e+00> : vector<4x32x8xf32>
    %47 = tpu.matmul %45, %46, %cst_24 {dimension_numbers = #tpu.dot_dimension_numbers<[2], [1], [1], [2], [0, 0, 0, 1, 1, 2], [0], [0]>} : vector<4x32x128xbf16>, vector<4x128x8xbf16>, vector<4x32x8xf32> -> vector<4x32x8xf32>
    "tpu.trace_stop"() : () -> ()
    %48 = tpu.concatenate %47, %44 in 2 : vector<4x32x8xf32>, vector<4x32x1xf32> -> vector<4x32x9xf32>
    %49 = arith.truncf %48 : vector<4x32x9xf32> to vector<4x32x9xbf16>
    %50 = arith.truncf %41 : vector<4x32x128xf32> to vector<4x32x128xbf16>
    "tpu.trace_start"() <{level = 10 : i32, message = "gmd,gmn->gdn"}> : () -> ()
    %cst_25 = arith.constant dense<0.000000e+00> : vector<4x9x128xf32>
    %51 = tpu.matmul %49, %50, %cst_25 {dimension_numbers = #tpu.dot_dimension_numbers<[1], [1], [2], [2], [0, 0, 0, 2, 1, 2], [0], [0]>} : vector<4x32x9xbf16>, vector<4x32x128xbf16>, vector<4x9x128xf32> -> vector<4x9x128xf32>
    "tpu.trace_stop"() : () -> ()
    %52 = vector.extract_strided_slice %51 {offsets = [0, 0, 0], sizes = [4, 8, 128], strides = [1, 1, 1]} : vector<4x9x128xf32> to vector<4x8x128xf32>
    %53 = vector.extract_strided_slice %51 {offsets = [0, 8, 0], sizes = [4, 1, 128], strides = [1, 1, 1]} : vector<4x9x128xf32> to vector<4x1x128xf32>
    %54 = tpu.reciprocal %53 {approx = true} : vector<4x1x128xf32> -> vector<4x1x128xf32>
    %55 = arith.mulf %53, %54 : vector<4x1x128xf32>
    %cst_26 = arith.constant 2.000000e+00 : f32
    %56 = vector.broadcast %cst_26 : f32 to vector<4x1x128xf32>
    %57 = arith.subf %56, %55 : vector<4x1x128xf32>
    %58 = arith.mulf %54, %57 : vector<4x1x128xf32>
    %59 = vector.broadcast %58 : vector<4x1x128xf32> to vector<4x8x128xf32>
    %60 = arith.mulf %52, %59 : vector<4x8x128xf32>
    %c0_27 = arith.constant 0 : index
    %c0_28 = arith.constant 0 : index
    %c0_29 = arith.constant 0 : index
    %61 = vector.load %arg7[%c0_27, %c0_28, %c0_29] : memref<4x8x128xf32, #tpu.memory_space<vmem>>, vector<4x8x128xf32>
    tpu.vector_store %arg7[%c0_27, %c0_28, %c0_29], %60 {strides = array<i32>} : memref<4x8x128xf32, #tpu.memory_space<vmem>>, vector<4x8x128xf32>,
    return
  }
  func.func @transform_0(%arg0: i32) -> (i32, i32, i32) {
    %c0_i32 = arith.constant 0 : i32
    %c0_i32_0 = arith.constant 0 : i32
    %c0_i32_1 = arith.constant 0 : i32
    return %arg0, %c0_i32, %c0_i32_0 : i32, i32, i32
  }
  func.func @transform_1(%arg0: i32) -> (i32, i32, i32) {
    %c0_i32 = arith.constant 0 : i32
    %c0_i32_0 = arith.constant 0 : i32
    %c0_i32_1 = arith.constant 0 : i32
    return %arg0, %c0_i32, %c0_i32_0 : i32, i32, i32
  }
  func.func @transform_2(%arg0: i32) -> (i32, i32, i32) {
    %c0_i32 = arith.constant 0 : i32
    %c0_i32_0 = arith.constant 0 : i32
    %c0_i32_1 = arith.constant 0 : i32
    return %arg0, %c0_i32, %c0_i32_0 : i32, i32, i32
  }
  func.func @transform_3(%arg0: i32) -> (i32, i32, i32) {
    %c0_i32 = arith.constant 0 : i32
    %c0_i32_0 = arith.constant 0 : i32
    %c0_i32_1 = arith.constant 0 : i32
    return %arg0, %c0_i32, %c0_i32_0 : i32, i32, i32
  }
  func.func @transform_4(%arg0: i32) -> (i32, i32, i32) {
    %c0_i32 = arith.constant 0 : i32
    %c0_i32_0 = arith.constant 0 : i32
    %c0_i32_1 = arith.constant 0 : i32
    return %arg0, %c0_i32, %c0_i32_0 : i32, i32, i32
  }
  func.func @transform_5(%arg0: i32) -> (i32, i32) {
    %c0_i32 = arith.constant 0 : i32
    %c0_i32_0 = arith.constant 0 : i32
    %c0_i32_1 = arith.constant 0 : i32
    return %c0_i32, %c0_i32_0 : i32, i32
  }
  func.func @transform_6(%arg0: i32) -> (i32, i32, i32) {
    %c0_i32 = arith.constant 0 : i32
    %c0_i32_0 = arith.constant 0 : i32
    %c0_i32_1 = arith.constant 0 : i32
    return %arg0, %c0_i32, %c0_i32_0 : i32, i32, i32
  }
}

</mosaic_0001>

<bundles_post_ra>
// kernel: tpu_custom_call.1
= control target key start
LH: loop header
LB: loop body
LE: loop exit
PB: predicated region body
PF: predicated region fallthrough
CT: control target
= control target key end

     0   :  { %11 = vsyncpa [#allocation3], 0  ;;  %s3312_s0 = inlined_call_operand.vmem [shape: f32[8,8,128], index: 0, kind: input, shape index: {}]   ;;  %s3313_s1 = inlined_call_operand.vmem [shape: f32[8,8,128], index: 1, kind: input, shape index: {}]   ;;  %s3314_s2 = inlined_call_operand.vmem [shape: f32[8,128,8], index: 2, kind: input, shape index: {}]   ;;  %s3315_s3 = inlined_call_operand.vmem [shape: f32[8,1,128], index: 3, kind: input, shape index: {}]   ;;  %s3316_s4 = inlined_call_operand.vmem [shape: f32[8,128,1], index: 4, kind: input, shape index: {}]   ;;  %s3317_s5 = inlined_call_operand.vmem [shape: f32[32,8], index: 5, kind: input, shape index: {}]   ;;  %s3318_s6 = inlined_call_operand.hbm [shape: f32[8,8,128], index: 6, kind: output, shape index: {}]  }
   0x1   :  { %13 = vsyncpa [#allocation3 + $0x1], 0  ;;  %s2590_s21 = smov 0   ;;  %s2592_s22 = smov 0  }
   0x2   :  { %s2594_s23 = smov 0   ;;  %s2596_s24 = smov 0  }
   0x3 LB: > { %s2611_s25 = sadd.s32 4294967295, %s2550_s24   ;;  %s2311_s26 = sadd.s32 4294967294, %s2550_s24   ;;  %s2550_s24 = sphi %s2596_s24, %s3324_s24   ;;  %s2546_s23 = sphi %s2594_s23, %s3323_s23   ;;  %s2542_s22 = sphi %s2592_s22, %s3322_s22   ;;  %s2538_s21 = sphi %s2590_s21, %s3321_s21  }
   0x4   : > { %s2615_s27 = sadd.s32 1, %s2550_s24   ;;  %s177_s28 = sadd.s32 1, %s2546_s23 }
   0x5   : > { %s174_s29 = ssub.s32 %s2550_s24, %s2615_s27  ;;  %p187_p0 = scmp.ne.s32.totalorder %s2546_s23, %s2542_s22 }
   0x6   : > { %p175_p1 = scmp.eq.s32.totalorder %s174_s29, 0  ;;  %p188_p2 = scmp.eq.s32.totalorder %s2611_s25, 1 }
   0x7   : > { %p193_p3 = scmp.ne.s32.totalorder %s2542_s22, %s2538_s21  ;;  %p194_p4 = scmp.eq.s32.totalorder %s2311_s26, 1 }
   0x8   : > { %s2626_s30 = scalar_select %p175_p1, %s2546_s23, %s177_s28  }
   0x9   : > { %p2628_p5 = por %p188_p2, %p187_p0  ;;  %p2632_p6 = por %p194_p4, %p193_p3 }
   0xa   : > { %p2314_p7 = scmp.ge.s32.totalorder %s2550_s24, 1  ;;  %p261_p8 = scmp.lt.s32.totalorder %s2550_s24, 3 }
   0xc   : > { %p262_p9 = pnand %p2314_p7, %p261_p8 }
   0xd   : > { %s2316_s9 = sshll.u32 (!%p262_p9), %s2611_s25, 2  ;;  %s2508_s28 = scalar_lea.hbm (!%p262_p9), %s3318_s6, 64 }
   0xe   : > { %265 = sbr.rel (%p262_p9) target bundleno = 872 (0x368), region = 44  ;;  %p313_p10 = scmp.lt.s32.totalorder (!%p262_p9), %s2316_s9, 7 }
  0x13   : > { %v2552_v0 = vmov 0   ;;  %s3326_s9 = smov (!%p313_p10, %s2316_s9), 7  ;;  %v885_v4 = vld [vmem:[%s3317_s5] sm:$0xff]  ;;  %v886_v6 = vld [vmem:[%s3317_s5 + $0x8] sm:$0xff]  ;;  %vm919_vm0 = vcmask 1043456   ;;  %vm912_vm1 = vcmask 64512  }
  0x14   : > { %2399 = vset.pattern.permute.xlu2 %v2552_v0  ;;  %2398 = vset.pattern.permute.xlu1 %v2552_v0  ;;  %s2352_s10 = sshll.u32 %s3326_s9, 7  ;;  %s2317_s11 = sshll.u32 %s3326_s9, 3  ;;  %v889_v13 = vpack.c.bf16 %v885_v4, %v885_v4  ;;  %v890_v14 = vpack.c.bf16 %v886_v6, %v886_v6  ;;  %v887_v47 = vld [vmem:[%s3317_s5 + $0x10] sm:$0xff]  ;;  %v888_v48 = vld [vmem:[%s3317_s5 + $0x18] sm:$0xff]  ;;  %vm1971_vm2 = vcmask 261120  }
  0x15   : > { %2397 = vset.pattern.permute.xlu0 %v2552_v0  ;;  %s2648_s14 = scalar_lea.vmem %s3316_s4, %s2352_s10  ;;  %s2653_s17 = scalar_lea.vmem %s3312_s0, %s2317_s11  ;;  %v891_v50 = vpack.c.bf16 %v887_v47, %v887_v47  ;;  %v892_v51 = vpack.c.bf16 %v888_v48, %v888_v48 }
  0x16   : > { %v441_v1 = vld [vmem:[%s2648_s14 + $0x20] sm:$0xff]  ;;  %v439_v2 = vld [vmem:[%s2648_s14 + $0x10] sm:$0xff]  ;;  %s2661_s20 = scalar_lea.vmem %s3313_s1, %s2317_s11  ;;  %s2667_s29 = scalar_lea.vmem %s3315_s3, %s3326_s9  ;;  %v346_v10 = vld [vmem:[%s2653_s17 + $0x8] sm:$0xff]  ;;  %v901_v26 = vunpack.c.l.b16 %v889_v13  ;;  %v902_v27 = vunpack.c.l.b16 %v890_v14 }
  0x17   : > { %v437_v3 = vld [vmem:[%s2648_s14] sm:$0xff]  ;;  %523 = vperm.xlu2 %2399, %v441_v1   ;;  %513 = vperm.xlu1 %2398, %v439_v2   ;;  %v350_v9 = vld [vmem:[%s2661_s20 + $0x8] sm:$0xff]  ;;  %v351_v15 = vld [vmem:[%s2661_s20 + $0x10] sm:$0xff]  ;;  %v903_v56 = vunpack.c.l.b16 %v891_v50  ;;  %v904_v57 = vunpack.c.l.b16 %v892_v51  ;;  %s309_s9 = sand.u32 1, %s2542_s22  }
  0x18   : > { %503 = vperm.xlu0 %2397, %v437_v3   ;;  %v349_v5 = vld [vmem:[%s2661_s20] sm:$0xff]  ;;  %v442_v17 = vld [vmem:[%s2648_s14 + $0x28] sm:$0xff]  ;;  %v440_v18 = vld [vmem:[%s2648_s14 + $0x18] sm:$0xff]  ;;  %v2708_v36 = vpack.c.b16 %v902_v27, %v901_v26 }
  0x19   : > { %v345_v7 = vld [vmem:[%s2653_s17] sm:$0xff]  ;;  %v347_v20 = vld [vmem:[%s2653_s17 + $0x10] sm:$0xff]  ;;  %v438_v21 = vld [vmem:[%s2648_s14 + $0x8] sm:$0xff]  ;;  %v2736_v58 = vpack.c.b16 %v904_v57, %v903_v56 }
  0x1a   : > { %v2408_v8 = vld [vmem:[%s2667_s29] ss:$0 sm:$0xff]  ;;  %v2409_v11 = vld [vmem:[%s2667_s29 + $0x1] ss:$0 sm:$0xff]  ;;  %v2410_v16 = vld [vmem:[%s2667_s29 + $0x2] ss:$0 sm:$0xff] }
  0x1b   : > { %v2681_v12 = vmul.f32 %v2408_v8, %v349_v5  ;;  %v2687_v19 = vmul.f32 %v2409_v11, %v350_v9  ;;  %v2694_v23 = vmul.f32 %v2410_v16, %v351_v15  ;;  %v2411_v30 = vld [vmem:[%s2667_s29 + $0x3] ss:$0 sm:$0xff]  ;;  %v352_v33 = vld [vmem:[%s2661_s20 + $0x18] sm:$0xff]  ;;  %v443_v44 = vld [vmem:[%s2648_s14 + $0x30] sm:$0xff]  ;;  %s2847_s29 = scalar_lea.vmem %s3314_s2, %s2352_s10  ;;  %s2315_s10 = sshll.u32 %s309_s9, 5 }
  0x1c   : > { %v348_v38 = vld [vmem:[%s2653_s17 + $0x18] sm:$0xff]  ;;  %v445_v40 = vld [vmem:[%s2648_s14 + $0x40] sm:$0xff]  ;;  %v2713_v41 = vmul.f32 %v2411_v30, %v352_v33  ;;  %v447_v54 = vld [vmem:[%s2648_s14 + $0x50] sm:$0xff] }
  0x1d   : > { %v2692_v22 = vpack.c.bf16 %v2681_v12, %v345_v7  ;;  %v2697_v24 = vpack.c.bf16 %v2687_v19, %v346_v10  ;;  %v2701_v28 = vpack.c.bf16 %v2694_v23, %v347_v20  ;;  %v444_v43 = vld [vmem:[%s2648_s14 + $0x38] sm:$0xff]  ;;  %v446_v55 = vld [vmem:[%s2648_s14 + $0x48] sm:$0xff]  ;;  %v451_v59 = vld [vmem:[%s2648_s14 + $0x70] sm:$0xff] }
  0x1e   : > { %v2719_v45 = vpack.c.bf16 %v2713_v41, %v348_v38  ;;  %v448_v53 = vld [vmem:[%s2648_s14 + $0x58] sm:$0xff]  ;;  %v450_v60 = vld [vmem:[%s2648_s14 + $0x68] sm:$0xff]  ;;  %v449_v61 = vld [vmem:[%s2648_s14 + $0x60] sm:$0xff] }
  0x1f   : > { %528 = vperm.xlu2 %2399, %v442_v17   ;;  %518 = vperm.xlu1 %2398, %v440_v18   ;;  %v909_v25 = vunpack.c.h.b16 %v2692_v22  ;;  %v966_v29 = vunpack.c.h.b16 %v2697_v24  ;;  %v1015_v32 = vunpack.c.h.b16 %v2701_v28  ;;  %v484_v62 = vld [vmem:[%s2648_s14 + $0x178] sm:$0xff]  ;;  %v483_v63 = vld [vmem:[%s2648_s14 + $0x170] sm:$0xff]  ;;  %v481_v1 = vld [vmem:[%s2648_s14 + $0x160] sm:$0xff]  ;;  %v908_v56 = vunpack.c.l.b16 %v2692_v22 }
  0x20   : > { %508 = vperm.xlu0 %2397, %v438_v21   ;;  %v1064_v46 = vunpack.c.h.b16 %v2719_v45  ;;  %v452_v0 = vld [vmem:[%s2648_s14 + $0x78] sm:$0xff]  ;;  %v499_v3 = vld [vmem:[%s2648_s14 + $0x1f0] sm:$0xff]  ;;  %v498_v4 = vld [vmem:[%s2648_s14 + $0x1e8] sm:$0xff] }
  0x21   : > { %v911_v31 = vpack.c.b16 %v909_v25, %v909_v25  ;;  %v968_v34 = vpack.c.b16 %v966_v29, %v966_v29  ;;  %v1017_v37 = vpack.c.b16 %v1015_v32, %v1015_v32  ;;  %v500_v2 = vld [vmem:[%s2648_s14 + $0x1f8] sm:$0xff]  ;;  %v497_v5 = vld [vmem:[%s2648_s14 + $0x1e0] sm:$0xff]  ;;  %v482_v6 = vld [vmem:[%s2648_s14 + $0x168] sm:$0xff] }
  0x22   : > { %v1066_v49 = vpack.c.b16 %v1064_v46, %v1064_v46  ;;  %v495_v7 = vld [vmem:[%s2648_s14 + $0x1d0] sm:$0xff]  ;;  %v480_v8 = vld [vmem:[%s2648_s14 + $0x158] sm:$0xff]  ;;  %v493_v14 = vld [vmem:[%s2648_s14 + $0x1c0] sm:$0xff] }
  0x23   : > { %v924_v35 = vsel %vm919_vm0, %v911_v31, 0  ;;  %v973_v39 = vsel %vm919_vm0, %v968_v34, 0  ;;  %v1022_v42 = vsel %vm919_vm0, %v1017_v37, 0  ;;  %v479_v9 = vld [vmem:[%s2648_s14 + $0x150] sm:$0xff]  ;;  %v468_v10 = vld [vmem:[%s2648_s14 + $0xf8] sm:$0xff]  ;;  %v478_v15 = vld [vmem:[%s2648_s14 + $0x148] sm:$0xff]  ;;  %v1112_v34 = vmul.f32 %v2681_v12, %v2681_v12 }
  0x24   : > { %952 = vmatpush.bf16.msra.mxu1 %v924_v35  ;;  %1001 = vmatpush.bf16.msra.mxu3 %v973_v39  ;;  %v1071_v52 = vsel %vm919_vm0, %v1066_v49, 0  ;;  %v467_v11 = vld [vmem:[%s2648_s14 + $0xf0] sm:$0xff]  ;;  %v496_v13 = vld [vmem:[%s2648_s14 + $0x1d8] sm:$0xff]  ;;  %v477_v16 = vld [vmem:[%s2648_s14 + $0x140] sm:$0xff] }
  0x25   : > { %v492_v17 = vld [vmem:[%s2648_s14 + $0x1b8] sm:$0xff]  ;;  %v463_v18 = vld [vmem:[%s2648_s14 + $0xd0] sm:$0xff]  ;;  %v494_v20 = vld [vmem:[%s2648_s14 + $0x1c8] sm:$0xff]  ;;  %v1125_v39 = vrot.slane %v1112_v34, 4 }
  0x26   : > { %v489_v25 = vld [vmem:[%s2648_s14 + $0x1a0] sm:$0xff]  ;;  %v490_v26 = vld [vmem:[%s2648_s14 + $0x1a8] sm:$0xff]  ;;  %v471_v31 = vld [vmem:[%s2648_s14 + $0x110] sm:$0xff] }
  0x27   : > { %2329 = vmatmul.msk.bf16.vlgmr.msra.gmra.mxu1 %vm912_vm1, %v2708_v36  ;;  %543 = vperm.xlu2 %2399, %v445_v40   ;;  %v465_v27 = vld [vmem:[%s2648_s14 + $0xe0] sm:$0xff]  ;;  %v462_v30 = vld [vmem:[%s2648_s14 + $0xc8] sm:$0xff]  ;;  %v487_v33 = vld [vmem:[%s2648_s14 + $0x190] sm:$0xff] }
  0x28   : > { %1050 = vmatpush.bf16.msrb.mxu1 %v1022_v42  ;;  %2333 = vmatmul.msk.bf16.vlgmr.msra.gmra.mxu3 %vm912_vm1, %v2708_v36  ;;  %v466_v32 = vld [vmem:[%s2648_s14 + $0xe8] sm:$0xff]  ;;  %v488_v35 = vld [vmem:[%s2648_s14 + $0x198] sm:$0xff]  ;;  %v475_v38 = vld [vmem:[%s2648_s14 + $0x130] sm:$0xff] }
  0x29   : > { %538 = vperm.xlu1 %2398, %v444_v43   ;;  %533 = vperm.xlu0 %2397, %v443_v44   ;;  %v1114_v43 = vmul.f32 %v2687_v19, %v2687_v19  ;;  %v1126_v44 = vadd.f32 %v1125_v39, %v1112_v34  ;;  %v459_v46 = vld [vmem:[%s2648_s14 + $0xb0] sm:$0xff]  ;;  %v476_v12 = vld [vmem:[%s2648_s14 + $0x138] sm:$0xff]  ;;  %v965_v19 = vunpack.c.l.b16 %v2697_v24 }
  0x2a   : > { %1099 = vmatpush.bf16.msrb.mxu3 %v1071_v52 }
  0x2b   : > { %v1137_v47 = vrot.slane %v1114_v43, 4  ;;  %v1127_v49 = vrot.slane %v1126_v44, 2 }
  0x2d   : > { %v1138_v52 = vadd.f32 %v1137_v47, %v1114_v43  ;;  %v381_v43 = vld [vmem:[%s2847_s29 + $0x40] sm:$0xff] }
  0x2f   : > { %558 = vperm.xlu2 %2399, %v448_v53   ;;  %v460_v53 = vld [vmem:[%s2648_s14 + $0xb8] sm:$0xff]  ;;  %v1139_v57 = vrot.slane %v1138_v52, 2 }
  0x31   : > { %553 = vperm.xlu1 %2398, %v447_v54   ;;  %548 = vperm.xlu0 %2397, %v446_v55   ;;  %v1128_v54 = vadd.f32 %v1127_v49, %v1126_v44  ;;  %v491_v55 = vld [vmem:[%s2648_s14 + $0x1b0] sm:$0xff] }
  0x32   : > { %v387_v44 = vld [vmem:[%s2847_s29 + $0x70] sm:$0xff] }
  0x37   : > { %2330 = vmatmul.msk.bf16.gmra.mxu1 %vm912_vm1, %v2736_v58  ;;  %573 = vperm.xlu2 %2399, %v451_v59   ;;  %v910_v59 = vpack.c.b16 %v908_v56, %v908_v56  ;;  %v384_v56 = vld [vmem:[%s2847_s29 + $0x58] sm:$0xff] }
  0x38   : > { %2334 = vmatmul.msk.bf16.gmra.mxu3 %vm912_vm1, %v2736_v58 }
  0x39   : > { %568 = vperm.xlu1 %2398, %v450_v60   ;;  %563 = vperm.xlu0 %2397, %v449_v61   ;;  %v967_v60 = vpack.c.b16 %v965_v19, %v965_v19  ;;  %v1129_v61 = vrot.slane %v1128_v54, 1 }
  0x3b   : > { %v970_v22 = vsel %vm919_vm0, %v967_v60, 0 }
  0x3c   : > { %982 = vmatpush.bf16.msra.mxu2 %v970_v22 }
  0x3f   : > { %738 = vperm.xlu2 %2399, %v484_v62   ;;  %v1014_v62 = vunpack.c.l.b16 %v2701_v28  ;;  %2331 = vmatmul.msk.bf16.vlgmr.msra.gmra.mxu2 %vm912_vm1, %v2708_v36 }
  0x41   : > { %733 = vperm.xlu1 %2398, %v483_v63   ;;  %578 = vperm.xlu0 %2397, %v452_v0   ;;  %v1063_v63 = vunpack.c.l.b16 %v2719_v45 }
  0x47   : > { %2337 = vmatmul.msk.bf16.vlgmr.msrb.gmra.mxu1 %vm912_vm1, %v2708_v36  ;;  %723 = vperm.xlu2 %2399, %v481_v1  }
  0x48   : > { %2341 = vmatmul.msk.bf16.vlgmr.msrb.gmra.mxu3 %vm912_vm1, %v2708_v36 }
  0x49   : > { %818 = vperm.xlu1 %2398, %v500_v2   ;;  %813 = vperm.xlu0 %2397, %v499_v3   ;;  %v921_v2 = vsel %vm919_vm0, %v910_v59, 0  ;;  %v1016_v3 = vpack.c.b16 %v1014_v62, %v1014_v62 }
  0x4a   : > { %933 = vmatpush.bf16.msra.mxu0 %v921_v2 }
  0x4b   : > { %v1019_v28 = vsel %vm919_vm0, %v1016_v3, 0 }
  0x4d   : > { %2327 = vmatmul.msk.bf16.vlgmr.msra.gmra.mxu0 %vm912_vm1, %v2708_v36 }
  0x4e   : > { %1031 = vmatpush.bf16.msrb.mxu0 %v1019_v28 }
  0x4f   : > { %808 = vperm.xlu2 %2399, %v498_v4   ;;  %v1065_v4 = vpack.c.b16 %v1063_v63, %v1063_v63  ;;  %2332 = vmatmul.msk.bf16.gmra.mxu2 %vm912_vm1, %v2736_v58 }
  0x51   : > { %803 = vperm.xlu1 %2398, %v497_v5   ;;  %728 = vperm.xlu0 %2397, %v482_v6   ;;  %v1140_v5 = vadd.f32 %v1139_v57, %v1138_v52  ;;  %v469_v6 = vld [vmem:[%s2648_s14 + $0x100] sm:$0xff]  ;;  %v1068_v45 = vsel %vm919_vm0, %v1065_v4, 0  ;;  %v419_v57 = vld [vmem:[%s2847_s29 + $0x170] sm:$0xff] }
  0x52   : > { %1080 = vmatpush.bf16.msrb.mxu2 %v1068_v45 }
  0x57   : > { %2338 = vmatmul.msk.bf16.gmra.mxu1 %vm912_vm1, %v2736_v58  ;;  %793 = vperm.xlu2 %2399, %v495_v7   ;;  %v1130_v7 = vadd.f32 %v1129_v61, %v1128_v54  ;;  %v385_v54 = vld [vmem:[%s2847_s29 + $0x60] sm:$0xff]  ;;  %v388_v61 = vld [vmem:[%s2847_s29 + $0x78] sm:$0xff] }
  0x58   : > { %2342 = vmatmul.msk.bf16.gmra.mxu3 %vm912_vm1, %v2736_v58 }
  0x59   : > { %718 = vperm.xlu1 %2398, %v480_v8   ;;  %713 = vperm.xlu0 %2397, %v479_v9   ;;  %v464_v8 = vld [vmem:[%s2648_s14 + $0xd8] sm:$0xff]  ;;  %v1141_v9 = vrot.slane %v1140_v5, 1 }
  0x5d   : > { %2328 = vmatmul.msk.bf16.gmra.mxu0 %vm912_vm1, %v2736_v58 }
  0x5f   : > { %658 = vperm.xlu2 %2399, %v468_v10   ;;  %v2825_v10 = vmul.f32 0.17677669, %v1130_v7  ;;  %2339 = vmatmul.msk.bf16.vlgmr.msrb.gmra.mxu2 %vm912_vm1, %v2708_v36 }
  0x61   : > { %653 = vperm.xlu1 %2398, %v467_v11   ;;  %798 = vperm.xlu0 %2397, %v496_v13  }
  0x67   : > { %783 = vperm.xlu2 %2399, %v493_v14  }
  0x69   : > { %708 = vperm.xlu1 %2398, %v478_v15   ;;  %703 = vperm.xlu0 %2397, %v477_v16   ;;  %v1142_v16 = vadd.f32 %v1141_v9, %v1140_v5 }
  0x6d   : > { %2335 = vmatmul.msk.bf16.vlgmr.msrb.gmra.mxu0 %vm912_vm1, %v2708_v36 }
  0x6f   : > { %778 = vperm.xlu2 %2399, %v492_v17   ;;  %v1116_v17 = vmul.f32 %v2694_v23, %v2694_v23  ;;  %2340 = vmatmul.msk.bf16.gmra.mxu2 %vm912_vm1, %v2736_v58 }
  0x71   : > { %633 = vperm.xlu1 %2398, %v463_v18   ;;  %788 = vperm.xlu0 %2397, %v494_v20   ;;  %v2774_v21 = vpop.permute.xlu2 %523  ;;  %v470_v20 = vld [vmem:[%s2648_s14 + $0x108] sm:$0xff] }
  0x77   : > { %763 = vperm.xlu2 %2399, %v489_v25   ;;  %v1118_v25 = vmul.f32 %v2713_v41, %v2713_v41 }
  0x79   : > { %768 = vperm.xlu1 %2398, %v490_v26   ;;  %643 = vperm.xlu0 %2397, %v465_v27   ;;  %v2779_v29 = vpop.permute.xlu2 %528  ;;  %v2840_v26 = vmul.f32 0.17677669, %v1142_v16  ;;  %v1149_v27 = vrot.slane %v1116_v17, 4  ;;  %v1161_v23 = vrot.slane %v1118_v25, 4 }
  0x7b   : > { %v2863_v47 = vadd.f32 %v1161_v23, %v1118_v25 }
  0x7d   : > { %v1163_v62 = vrot.slane %v2863_v47, 2  ;;  %2336 = vmatmul.msk.bf16.gmra.mxu0 %vm912_vm1, %v2736_v58 }
  0x7f   : > { %628 = vperm.xlu2 %2399, %v462_v30   ;;  %v377_v30 = vld [vmem:[%s2847_s29 + $0x20] sm:$0xff] }
  0x80   : > { %v825_v39 = vmul.f32 %v2774_v21, %v377_v30  ;;  %v378_v21 = vld [vmem:[%s2847_s29 + $0x28] sm:$0xff] }
  0x81   : > { %673 = vperm.xlu1 %2398, %v471_v31   ;;  %648 = vperm.xlu0 %2397, %v466_v32   ;;  %v2788_v37 = vpop.permute.xlu2 %543  ;;  %v2880_v3 = vmul.f32 %v2779_v29, %v378_v21  ;;  %v375_v29 = vld [vmem:[%s2847_s29 + $0x10] sm:$0xff] }
  0x82   : > { %v1507_v60 = vpack.c.bf16 %v825_v39, %v825_v39  ;;  %v379_v21 = vld [vmem:[%s2847_s29 + $0x30] sm:$0xff] }
  0x84   : > { %v2890_v16 = vunpack.c.l.b16 %v1507_v60 }
  0x87   : > { %753 = vperm.xlu2 %2399, %v487_v33   ;;  %v420_v33 = vld [vmem:[%s2847_s29 + $0x178] sm:$0xff] }
  0x89   : > { %758 = vperm.xlu1 %2398, %v488_v35   ;;  %693 = vperm.xlu0 %2397, %v475_v38   ;;  %v2791_v40 = vpop.permute.xlu1 %513  ;;  %v2799_v48 = vpop.permute.xlu2 %558  ;;  %v1150_v38 = vadd.f32 %v1149_v27, %v1116_v17  ;;  %v382_v27 = vld [vmem:[%s2847_s29 + $0x48] sm:$0xff] }
  0x8a   : > { %v2793_v42 = vpop.permute.xlu0 %503  ;;  %v832_v4 = vmul.f32 %v2799_v48, %v384_v56 }
  0x8b   : > { %v1151_v59 = vrot.slane %v1150_v38, 2 }
  0x91   : > { %613 = vperm.xlu1 %2398, %v459_v46   ;;  %698 = vperm.xlu0 %2397, %v476_v12   ;;  %v2801_v50 = vpop.permute.xlu1 %518  ;;  %v574_v0 = vpop.permute.xlu2 %573  ;;  %v485_v12 = vld [vmem:[%s2648_s14 + $0x180] sm:$0xff] }
  0x92   : > { %v2803_v51 = vpop.permute.xlu0 %508  ;;  %v835_v19 = vmul.f32 %v574_v0, %v387_v44 }
  0x94   : > { %v1517_v45 = vpack.c.bf16 %v835_v19, %v835_v19 }
  0x99   : > { %618 = vperm.xlu1 %2398, %v460_v53   ;;  %773 = vperm.xlu0 %2397, %v491_v55   ;;  %v739_v14 = vpop.permute.xlu2 %738  ;;  %v386_v53 = vld [vmem:[%s2847_s29 + $0x68] sm:$0xff]  ;;  %v829_v55 = vmul.f32 %v2788_v37, %v381_v43  ;;  %v383_v37 = vld [vmem:[%s2847_s29 + $0x50] sm:$0xff] }
  0x9a   : > { %v868_v52 = vmul.f32 %v739_v14, %v420_v33  ;;  %v1514_v33 = vpack.c.bf16 %v832_v4, %v832_v4 }
  0x9b   : > { %v2811_v1 = vpop.permute.xlu1 %538  ;;  %v2815_v24 = vpop.permute.xlu0 %533  ;;  %v1511_v28 = vpack.c.bf16 %v829_v55, %v829_v55 }
  0x9c   : > { %v1550_v5 = vpack.c.bf16 %v868_v52, %v868_v52  ;;  %v380_v52 = vld [vmem:[%s2847_s29 + $0x38] sm:$0xff] }
  0x9d   : > { %v2899_v44 = vunpack.c.l.b16 %v1511_v28  ;;  %v828_v4 = vmul.f32 %v2811_v1, %v380_v52  ;;  %v417_v28 = vld [vmem:[%s2847_s29 + $0x160] sm:$0xff]  ;;  %v1164_v1 = vadd.f32 %v1163_v62, %v2863_v47 }
  0x9e   : > { %v1768_v39 = vunpack.c.l.b16 %v1550_v5 }
  0xa1   : > { %663 = vperm.xlu1 %2398, %v469_v6   ;;  %638 = vperm.xlu0 %2397, %v464_v8   ;;  %v2865_v49 = vpop.permute.xlu2 %723 }
  0xa3   : > { %v2827_v11 = vpop.permute.xlu1 %553  ;;  %v2829_v13 = vpop.permute.xlu0 %548 }
  0xa4   : > { %v2831_v15 = vpop.f32.mrf.mxu1  ;;  %v831_v25 = vmul.f32 %v2827_v11, %v383_v37  ;;  %v830_v55 = vmul.f32 %v2829_v13, %v382_v27 }
  0xa5   : > { %v1256_v18 = vsub.f32 %v2831_v15, %v2825_v10 }
  0xa6   : > { %v1513_v60 = vpack.c.bf16 %v831_v25, %v831_v25  ;;  %v376_v25 = vld [vmem:[%s2847_s29 + $0x18] sm:$0xff] }
  0xa7   : > { %v2933_v47 = vmul.f32 %v2801_v50, %v376_v25 }
  0xa9   : > { %668 = vperm.xlu1 %2398, %v470_v20   ;;  %v1152_v20 = vadd.f32 %v1151_v59, %v1150_v38  ;;  %v1609_v38 = vunpack.c.l.b16 %v1517_v45  ;;  %v809_v11 = vpop.permute.xlu2 %808  ;;  %v434_v45 = vld [vmem:[%s2847_s29 + $0x1e8] sm:$0xff] }
  0xaa   : > { %v882_v52 = vmul.f32 %v809_v11, %v434_v45 }
  0xab   : > { %v569_v31 = vpop.permute.xlu1 %568  ;;  %v2850_v41 = vpop.f32.mrf.mxu3  ;;  %v1153_v59 = vrot.slane %v1152_v20, 1 }
  0xac   : > { %v564_v32 = vpop.permute.xlu0 %563  ;;  %v1264_v34 = vsub.f32 %v2850_v41, %v2840_v26  ;;  %v2855_v35 = vpop.f32.mrf.mxu1  ;;  %v834_v63 = vmul.f32 %v569_v31, %v386_v53 }
  0xad   : > { %v1258_v46 = vsub.f32 %v2855_v35, %v2825_v10  ;;  %v833_v2 = vmul.f32 %v564_v32, %v385_v54  ;;  %v1508_v32 = vpack.c.bf16 %v2880_v3, %v2880_v3  ;;  %v436_v54 = vld [vmem:[%s2847_s29 + $0x1f8] sm:$0xff]  ;;  %v1184_v56 = vmax.f32 %v2831_v15, %v2855_v35  ;;  %v415_v3 = vld [vmem:[%s2847_s29 + $0x150] sm:$0xff] }
  0xae   : > { %v1516_v23 = vpack.c.bf16 %v834_v63, %v834_v63 }
  0xaf   : > { %v1515_v30 = vpack.c.bf16 %v833_v2, %v833_v2 }
  0xb1   : > { %743 = vperm.xlu1 %2398, %v485_v12   ;;  %v2902_v12 = vmul.f32 %v2791_v40, %v375_v29  ;;  %v1607_v40 = vunpack.c.l.b16 %v1515_v30 }
  0xb3   : > { %v734_v22 = vpop.permute.xlu1 %733  ;;  %v2884_v0 = vpop.f32.mrf.mxu3 }
  0xb4   : > { %v867_v6 = vmul.f32 %v734_v22, %v419_v57  ;;  %v579_v7 = vpop.permute.xlu0 %578  ;;  %v1266_v8 = vsub.f32 %v2884_v0, %v2840_v26  ;;  %v2888_v14 = vpop.f32.mrf.mxu1  ;;  %v435_v57 = vld [vmem:[%s2847_s29 + $0x1f0] sm:$0xff]  ;;  %v1606_v22 = vunpack.c.l.b16 %v1514_v33  ;;  %v1512_v33 = vpack.c.bf16 %v830_v55, %v830_v55 }
  0xb5   : > { %v836_v9 = vmul.f32 %v579_v7, %v388_v61  ;;  %v1260_v17 = vsub.f32 %v2888_v14, %v2825_v10  ;;  %v1608_v61 = vunpack.c.l.b16 %v1516_v23  ;;  %v1185_v5 = vmax.f32 %v1184_v56, %v2888_v14 }
  0xb6   : > { %v1549_v48 = vpack.c.bf16 %v867_v6, %v867_v6  ;;  %v827_v7 = vmul.f32 %v2815_v24, %v379_v21  ;;  %v1154_v24 = vadd.f32 %v1153_v59, %v1152_v20  ;;  %v1202_v62 = vmax.f32 %v2850_v41, %v2884_v0  ;;  %v433_v21 = vld [vmem:[%s2847_s29 + $0x1e0] sm:$0xff] }
  0xb7   : > { %v1518_v31 = vpack.c.bf16 %v836_v9, %v836_v9  ;;  %v1165_v55 = vrot.slane %v1164_v1, 1 }
  0xb8   : > { %v1767_v43 = vunpack.c.l.b16 %v1549_v48  ;;  %v1509_v11 = vpack.c.bf16 %v827_v7, %v827_v7 }
  0xb9   : > { %v1610_v53 = vunpack.c.l.b16 %v1518_v31  ;;  %v1605_v31 = vunpack.c.l.b16 %v1513_v60  ;;  %v1604_v60 = vunpack.c.l.b16 %v1512_v33 }
  0xba   : > { %v1776_v19 = vpack.c.b16 %v1768_v39, %v1767_v43  ;;  %v1617_v39 = vpack.c.b16 %v1608_v61, %v1607_v40  ;;  %v2941_v61 = vpop.permute.xlu2 %793  ;;  %v1601_v33 = vunpack.c.l.b16 %v1509_v11  ;;  %v373_v11 = vld [vmem:[%s2847_s29] sm:$0xff] }
  0xbb   : > { %v1618_v63 = vpack.c.b16 %v1610_v53, %v1609_v38  ;;  %v819_v2 = vpop.permute.xlu1 %818  ;;  %v2913_v13 = vpop.f32.mrf.mxu3  ;;  %v865_v38 = vmul.f32 %v2865_v49, %v417_v28  ;;  %v1510_v49 = vpack.c.bf16 %v828_v4, %v828_v4  ;;  %v1616_v59 = vpack.c.b16 %v1606_v22, %v1605_v31  ;;  %v374_v31 = vld [vmem:[%s2847_s29 + $0x8] sm:$0xff] }
  0xbc   : > { %v884_v37 = vmul.f32 %v819_v2, %v436_v54  ;;  %v814_v6 = vpop.permute.xlu0 %813  ;;  %1785 = vmatpush.bf16.msra.mxu2 %v1776_v19  ;;  %v1268_v9 = vsub.f32 %v2913_v13, %v2840_v26  ;;  %v2920_v48 = vpop.f32.mrf.mxu1  ;;  %v418_v19 = vld [vmem:[%s2847_s29 + $0x168] sm:$0xff]  ;;  %v1203_v36 = vmax.f32 %v1202_v62, %v2913_v13  ;;  %v1564_v2 = vpack.c.bf16 %v882_v52, %v882_v52 }
  0xbd   : > { %v883_v29 = vmul.f32 %v814_v6, %v435_v57  ;;  %1627 = vmatpush.bf16.msra.mxu0 %v1618_v63  ;;  %v1186_v23 = vmax.f32 %v1185_v5, %v2920_v48  ;;  %v1262_v30 = vsub.f32 %v2920_v48, %v2825_v10  ;;  %v2939_v57 = vmul.f32 0.17677669, %v1154_v24 }
  0xbe   : > { %v1566_v27 = vpack.c.bf16 %v884_v37, %v884_v37  ;;  %v1547_v63 = vpack.c.bf16 %v865_v38, %v865_v38  ;;  %v1602_v25 = vunpack.c.l.b16 %v1510_v49  ;;  %v1845_v52 = vunpack.c.l.b16 %v1564_v2  ;;  %v416_v49 = vld [vmem:[%s2847_s29 + $0x158] sm:$0xff] }
  0xbf   : > { %v1565_v43 = vpack.c.bf16 %v883_v29, %v883_v29  ;;  %v1187_v54 = vrot.slane %v1186_v23, 4  ;;  %v1166_v29 = vadd.f32 %v1165_v55, %v1164_v1  ;;  %v1600_v1 = vunpack.c.l.b16 %v1508_v32 }
  0xc0   : > { %v1847_v53 = vunpack.c.l.b16 %v1566_v27  ;;  %v1765_v62 = vunpack.c.l.b16 %v1547_v63 }
  0xc1   : > { %v1846_v20 = vunpack.c.l.b16 %v1565_v43  ;;  %1628 = vmatpush.bf16.msra.mxu0 %v1617_v39  ;;  %v1188_v56 = vmax.f32 %v1186_v23, %v1187_v54  ;;  %v1615_v39 = vpack.c.b16 %v1604_v60, %v2899_v44  ;;  %v2958_v55 = vmul.f32 0.17677669, %v1166_v29  ;;  %v431_v29 = vld [vmem:[%s2847_s29 + $0x1d0] sm:$0xff] }
  0xc2   : > { %v1505_v44 = vpack.c.bf16 %v2902_v12, %v2902_v12  ;;  %v1614_v60 = vpack.c.b16 %v1602_v25, %v1601_v33  ;;  %v659_v12 = vpop.permute.xlu2 %658 }
  0xc3   : > { %v1855_v50 = vpack.c.b16 %v1847_v53, %v1846_v20  ;;  %v804_v40 = vpop.permute.xlu1 %803  ;;  %v2944_v5 = vpop.f32.mrf.mxu3  ;;  %v1189_v6 = vrot.slane %v1188_v56, 2 }
  0xc4   : > { %v881_v37 = vmul.f32 %v804_v40, %v433_v21  ;;  %v729_v4 = vpop.permute.xlu0 %728  ;;  %v1204_v7 = vmax.f32 %v1203_v36, %v2944_v5  ;;  %v1270_v22 = vsub.f32 %v2944_v5, %v2840_v26  ;;  %v2949_v45 = vpop.f32.mrf.mxu1 }
  0xc5   : > { %v866_v28 = vmul.f32 %v729_v4, %v418_v19  ;;  %1629 = vmatpush.bf16.msra.mxu0 %v1616_v59  ;;  %v1272_v23 = vsub.f32 %v2949_v45, %v2939_v57  ;;  %1864 = vmatpush.bf16.msra.mxu3 %v1855_v50  ;;  %v1190_v24 = vmax.f32 %v1188_v56, %v1189_v6  ;;  %v404_v4 = vld [vmem:[%s2847_s29 + $0xf8] sm:$0xff] }
  0xc6   : > { %v1563_v27 = vpack.c.bf16 %v881_v37, %v881_v37  ;;  %v1205_v43 = vrot.slane %v1204_v7, 4  ;;  %v822_v56 = vmul.f32 %v2803_v51, %v374_v31  ;;  %v1506_v59 = vpack.c.bf16 %v2933_v47, %v2933_v47 }
  0xc7   : > { %v1548_v38 = vpack.c.bf16 %v866_v28, %v866_v28  ;;  %v1191_v54 = vrot.slane %v1190_v24, 1  ;;  %v821_v51 = vmul.f32 %v2793_v42, %v373_v11  ;;  %v1613_v28 = vpack.c.b16 %v1600_v1, %v2890_v16 }
  0xc8   : > { %v1844_v53 = vunpack.c.l.b16 %v1563_v27  ;;  %v1206_v20 = vmax.f32 %v1204_v7, %v1205_v43  ;;  %v1597_v42 = vunpack.c.l.b16 %v1505_v44  ;;  %v1598_v31 = vunpack.c.l.b16 %v1506_v59 }
  0xc9   : > { %v1766_v21 = vunpack.c.l.b16 %v1548_v38  ;;  %1630 = vmatpush.bf16.msra.mxu0 %v1615_v39  ;;  %v1192_v32 = vmax.f32 %v1190_v24, %v1191_v54  ;;  %v1504_v33 = vpack.c.bf16 %v822_v56, %v822_v56  ;;  %v852_v43 = vmul.f32 %v659_v12, %v404_v4  ;;  %v403_v54 = vld [vmem:[%s2847_s29 + $0xf0] sm:$0xff] }
  0xca   : > { %v1854_v19 = vpack.c.b16 %v1845_v52, %v1844_v53  ;;  %v1207_v40 = vrot.slane %v1206_v20, 2  ;;  %v1503_v16 = vpack.c.bf16 %v821_v51, %v821_v51  ;;  %v879_v1 = vmul.f32 %v2941_v61, %v431_v29 }
  0xcb   : > { %v1775_v36 = vpack.c.b16 %v1766_v21, %v1765_v62  ;;  %v719_v50 = vpop.permute.xlu1 %718  ;;  %v2968_v63 = vpop.f32.mrf.mxu3  ;;  %1247 = vmax.xlane.f32.xlu0 %v1192_v32  ;;  %v1612_v21 = vpack.c.b16 %v1598_v31, %v1597_v42  ;;  %v1534_v56 = vpack.c.bf16 %v852_v43, %v852_v43 }
  0xcc   : > { %v864_v2 = vmul.f32 %v719_v50, %v416_v49  ;;  %v714_v37 = vpop.permute.xlu0 %713  ;;  %1865 = vmatpush.bf16.msra.mxu3 %v1854_v19  ;;  %v1280_v6 = vsub.f32 %v2968_v63, %v2958_v55  ;;  %v2974_v47 = vpop.f32.mrf.mxu1  ;;  %v1208_v24 = vmax.f32 %v1206_v20, %v1207_v40  ;;  %v432_v20 = vld [vmem:[%s2847_s29 + $0x1d8] sm:$0xff]  ;;  %v1596_v49 = vunpack.c.l.b16 %v1504_v33 }
  0xcd   : > { %v863_v7 = vmul.f32 %v714_v37, %v415_v3  ;;  %1631 = vmatpush.bf16.msra.mxu0 %v1614_v60  ;;  %1786 = vmatpush.bf16.msra.mxu2 %v1775_v36  ;;  %v1274_v27 = vsub.f32 %v2974_v47, %v2939_v57  ;;  %v1595_v59 = vunpack.c.l.b16 %v1503_v16  ;;  %v1561_v58 = vpack.c.bf16 %v879_v1, %v879_v1 }
  0xce   : > { %v1546_v25 = vpack.c.bf16 %v864_v2, %v864_v2  ;;  %v1209_v52 = vrot.slane %v1208_v24, 1  ;;  %v1689_v51 = vunpack.c.l.b16 %v1534_v56  ;;  %v1220_v29 = vmax.f32 %v2949_v45, %v2974_v47 }
  0xcf   : > { %v1545_v39 = vpack.c.bf16 %v863_v7, %v863_v7  ;;  %v1611_v2 = vpack.c.b16 %v1596_v49, %v1595_v59  ;;  %v1842_v4 = vunpack.c.l.b16 %v1561_v58  ;;  %v430_v58 = vld [vmem:[%s2847_s29 + $0x1c8] sm:$0xff] }
  0xd0   : > { %v1764_v38 = vunpack.c.l.b16 %v1546_v25  ;;  %v1210_v62 = vmax.f32 %v1208_v24, %v1209_v52  ;;  %v413_v24 = vld [vmem:[%s2847_s29 + $0x140] sm:$0xff] }
  0xd1   : > { %v1763_v53 = vunpack.c.l.b16 %v1545_v39  ;;  %1632 = vmatpush.bf16.msra.mxu0 %v1613_v28  ;;  %v414_v28 = vld [vmem:[%s2847_s29 + $0x148] sm:$0xff] }
  0xd2   : > { %1249 = vmax.xlane.f32.xlu2 %v1210_v62  ;;  %v429_v62 = vld [vmem:[%s2847_s29 + $0x1c0] sm:$0xff] }
  0xd3   : > { %v1774_v44 = vpack.c.b16 %v1764_v38, %v1763_v53  ;;  %v654_v11 = vpop.permute.xlu1 %653  ;;  %v2987_v19 = vpop.f32.mrf.mxu3  ;;  %v473_v53 = vld [vmem:[%s2648_s14 + $0x120] sm:$0xff] }
  0xd4   : > { %v851_v3 = vmul.f32 %v654_v11, %v403_v54  ;;  %v799_v32 = vpop.permute.xlu0 %798  ;;  %v1282_v61 = vsub.f32 %v2987_v19, %v2958_v55  ;;  %v2991_v36 = vpop.f32.mrf.mxu1 }
  0xd5   : > { %v880_v60 = vmul.f32 %v799_v32, %v432_v20  ;;  %1633 = vmatpush.bf16.msra.mxu0 %v1612_v21  ;;  %v1276_v40 = vsub.f32 %v2991_v36, %v2939_v57  ;;  %1787 = vmatpush.bf16.msra.mxu2 %v1774_v44  ;;  %v1221_v33 = vmax.f32 %v1220_v29, %v2991_v36  ;;  %v784_v54 = vpop.permute.xlu2 %783  ;;  %v406_v36 = vld [vmem:[%s2847_s29 + $0x108] sm:$0xff] }
  0xd6   : > { %v1533_v50 = vpack.c.bf16 %v851_v3, %v851_v3  ;;  %v877_v56 = vmul.f32 %v784_v54, %v429_v62  ;;  %v1238_v3 = vmax.f32 %v2968_v63, %v2987_v19  ;;  %v461_v62 = vld [vmem:[%s2648_s14 + $0xc0] sm:$0xff] }
  0xd7   : > { %v1562_v37 = vpack.c.bf16 %v880_v60, %v880_v60 }
  0xd8   : > { %v1688_v12 = vunpack.c.l.b16 %v1533_v50 }
  0xd9   : > { %v1843_v7 = vunpack.c.l.b16 %v1562_v37  ;;  %1634 = vmatpush.bf16.msra.mxu0 %v1611_v2 }
  0xda   : > { %v1697_v25 = vpack.c.b16 %v1689_v51, %v1688_v12  ;;  %v1559_v12 = vpack.c.bf16 %v877_v56, %v877_v56 }
  0xdb   : > { %v1853_v42 = vpack.c.b16 %v1843_v7, %v1842_v4  ;;  %v709_v31 = vpop.permute.xlu1 %708  ;;  %v3000_v39 = vpop.f32.mrf.mxu3 }
  0xdc   : > { %v862_v43 = vmul.f32 %v709_v31, %v414_v28  ;;  %v704_v38 = vpop.permute.xlu0 %703  ;;  %1706 = vmatpush.bf16.msra.mxu1 %v1697_v25  ;;  %v1284_v52 = vsub.f32 %v3000_v39, %v2958_v55  ;;  %v3004_v1 = vpop.f32.mrf.mxu1  ;;  %v1239_v60 = vmax.f32 %v1238_v3, %v3000_v39  ;;  %v474_v28 = vld [vmem:[%s2648_s14 + $0x128] sm:$0xff]  ;;  %v1840_v31 = vunpack.c.l.b16 %v1559_v12 }
  0xdd   : > { %v861_v16 = vmul.f32 %v704_v38, %v413_v24  ;;  %1866 = vmatpush.bf16.msra.mxu3 %v1853_v42  ;;  %v1222_v21 = vmax.f32 %v1221_v33, %v3004_v1 }
  0xde   : > { %v1544_v20 = vpack.c.bf16 %v862_v43, %v862_v43 }
  0xdf   : > { %v1543_v49 = vpack.c.bf16 %v861_v16, %v861_v16  ;;  %v1223_v11 = vrot.slane %v1222_v21, 4  ;;  %683 = vperm.xlu0 %2397, %v473_v53  }
  0xe0   : > { %v1762_v44 = vunpack.c.l.b16 %v1544_v20 }
  0xe1   : > { %v1761_v32 = vunpack.c.l.b16 %v1543_v49  ;;  %v1224_v59 = vmax.f32 %v1222_v21, %v1223_v11  ;;  %v401_v49 = vld [vmem:[%s2847_s29 + $0xe0] sm:$0xff]  ;;  %v779_v11 = vpop.permute.xlu2 %778 }
  0xe3   : > { %v1773_v50 = vpack.c.b16 %v1762_v44, %v1761_v32  ;;  %v3013_v2 = vpop.f32.mrf.mxu3  ;;  %v1225_v51 = vrot.slane %v1224_v59, 2  ;;  %v3018_v21 = vpop.permute.xlu1 %633  ;;  %v402_v32 = vld [vmem:[%s2847_s29 + $0xe8] sm:$0xff] }
  0xe4   : > { %v789_v37 = vpop.permute.xlu0 %788  ;;  %v1240_v4 = vmax.f32 %v1239_v60, %v3013_v2 }
  0xe5   : > { %v878_v7 = vmul.f32 %v789_v37, %v430_v58  ;;  %1788 = vmatpush.bf16.msra.mxu2 %v1773_v50  ;;  %v1226_v29 = vmax.f32 %v1224_v59, %v1225_v51  ;;  %v472_v50 = vld [vmem:[%s2648_s14 + $0x118] sm:$0xff] }
  0xe6   : > { %v1241_v25 = vrot.slane %v1240_v4, 4 }
  0xe7   : > { %v1560_v24 = vpack.c.bf16 %v878_v7, %v878_v7  ;;  %688 = vperm.xlu0 %2397, %v474_v28   ;;  %v1227_v42 = vrot.slane %v1226_v29, 1 }
  0xe8   : > { %v1242_v33 = vmax.f32 %v1240_v4, %v1241_v25  ;;  %v486_v25 = vld [vmem:[%s2648_s14 + $0x188] sm:$0xff] }
  0xe9   : > { %v1841_v43 = vunpack.c.l.b16 %v1560_v24  ;;  %v1228_v38 = vmax.f32 %v1226_v29, %v1227_v42  ;;  %v764_v7 = vpop.permute.xlu2 %763  ;;  %v411_v24 = vld [vmem:[%s2847_s29 + $0x130] sm:$0xff] }
  0xea   : > { %v1243_v53 = vrot.slane %v1242_v33, 2 }
  0xeb   : > { %v1852_v16 = vpack.c.b16 %v1841_v43, %v1840_v31  ;;  %1251 = vmax.xlane.f32.xlu1 %v1228_v38  ;;  %v769_v51 = vpop.permute.xlu1 %768  ;;  %v458_v43 = vld [vmem:[%s2648_s14 + $0xa8] sm:$0xff] }
  0xec   : > { %v644_v54 = vpop.permute.xlu0 %643  ;;  %v1244_v20 = vmax.f32 %v1242_v33, %v1243_v53  ;;  %v412_v33 = vld [vmem:[%s2847_s29 + $0x138] sm:$0xff] }
  0xed   : > { %1867 = vmatpush.bf16.msra.mxu3 %v1852_v16  ;;  %v849_v56 = vmul.f32 %v644_v54, %v401_v49  ;;  %v428_v53 = vld [vmem:[%s2847_s29 + $0x1b8] sm:$0xff] }
  0xee   : > { %v1245_v44 = vrot.slane %v1244_v20, 1 }
  0xef   : > { %623 = vperm.xlu0 %2397, %v461_v62   ;;  %v1531_v58 = vpack.c.bf16 %v849_v56, %v849_v56  ;;  %v426_v56 = vld [vmem:[%s2847_s29 + $0x1a8] sm:$0xff] }
  0xf0   : > { %v1246_v3 = vmax.f32 %v1244_v20, %v1245_v44  ;;  %v453_v20 = vld [vmem:[%s2648_s14 + $0x80] sm:$0xff]  ;;  %v876_v44 = vmul.f32 %v779_v11, %v428_v53 }
  0xf1   : > { %v1686_v12 = vunpack.c.l.b16 %v1531_v58  ;;  %v3029_v38 = vpop.permute.xlu2 %628  ;;  %v425_v58 = vld [vmem:[%s2847_s29 + $0x1a0] sm:$0xff] }
  0xf2   : > { %1253 = vmax.xlane.f32.xlu2 %v1246_v3  ;;  %v457_v3 = vld [vmem:[%s2648_s14 + $0xa0] sm:$0xff] }
  0xf3   : > { %v3025_v31 = vpop.permute.xlu1 %673 }
  0xf4   : > { %v649_v59 = vpop.permute.xlu0 %648 }
  0xf5   : > { %v850_v60 = vmul.f32 %v649_v59, %v402_v32 }
  0xf7   : > { %v1532_v37 = vpack.c.bf16 %v850_v60, %v850_v60  ;;  %678 = vperm.xlu0 %2397, %v472_v50   ;;  %v427_v60 = vld [vmem:[%s2847_s29 + $0x1b0] sm:$0xff] }
  0xf8   : > { %v455_v50 = vld [vmem:[%s2648_s14 + $0x90] sm:$0xff] }
  0xf9   : > { %v1687_v4 = vunpack.c.l.b16 %v1532_v37  ;;  %v874_v37 = vmul.f32 %v769_v51, %v426_v56 }
  0xfb   : > { %v1696_v28 = vpack.c.b16 %v1687_v4, %v1686_v12  ;;  %v1558_v4 = vpack.c.bf16 %v876_v44, %v876_v44 }
  0xfc   : > { %v694_v29 = vpop.permute.xlu0 %693 }
  0xfd   : > { %1707 = vmatpush.bf16.msra.mxu1 %v1696_v28  ;;  %v859_v42 = vmul.f32 %v694_v29, %v411_v24  ;;  %v759_v28 = vpop.permute.xlu1 %758  ;;  %v424_v29 = vld [vmem:[%s2847_s29 + $0x198] sm:$0xff]  ;;  %v873_v24 = vmul.f32 %v764_v7, %v425_v58  ;;  %v1839_v51 = vunpack.c.l.b16 %v1558_v4 }
  0xfe   : > { %v872_v53 = vmul.f32 %v759_v28, %v424_v29  ;;  %v456_v7 = vld [vmem:[%s2648_s14 + $0x98] sm:$0xff] }
  0xff   : > { %748 = vperm.xlu0 %2397, %v486_v25   ;;  %v1541_v54 = vpack.c.bf16 %v859_v42, %v859_v42  ;;  %v754_v42 = vpop.permute.xlu2 %753 }
 0x101   : > { %v1759_v32 = vunpack.c.l.b16 %v1541_v54 }
 0x104   : > { %v699_v16 = vpop.permute.xlu0 %698  ;;  %608 = vperm.xlu1 %2398, %v458_v43   ;;  %v399_v43 = vld [vmem:[%s2847_s29 + $0xd0] sm:$0xff] }
 0x105   : > { %v860_v62 = vmul.f32 %v699_v16, %v412_v33  ;;  %v423_v33 = vld [vmem:[%s2847_s29 + $0x190] sm:$0xff]  ;;  %v1556_v16 = vpack.c.bf16 %v874_v37, %v874_v37  ;;  %v847_v44 = vmul.f32 %v3018_v21, %v399_v43  ;;  %v3045_v43 = vpop.permute.xlu1 %613 }
 0x107   : > { %v1542_v49 = vpack.c.bf16 %v860_v62, %v860_v62  ;;  %583 = vperm.xlu0 %2397, %v453_v20   ;;  %v454_v62 = vld [vmem:[%s2648_s14 + $0x88] sm:$0xff]  ;;  %v1555_v20 = vpack.c.bf16 %v873_v24, %v873_v24  ;;  %s2354_s14 = sshll.u32 %s2611_s25, 5  ;;  %s2189_s25 = scalar_lea.sflag [#allocation3], %s309_s9 }
 0x108   : > { %s2200_s11 = scalar_lea.hbm %s3318_s6, %s2354_s14 }
 0x109   : > { %v1760_v59 = vunpack.c.l.b16 %v1542_v49  ;;  %v871_v49 = vmul.f32 %v754_v42, %v423_v33  ;;  %s2203_s16 = sshll.u32 %s2200_s11, 4  ;;  %s2204_s16 = int_to_ptr.hbm [resolvable:$true] %s2203_s16 }
 0x10a   : > { %603 = vperm.xlu2 %2399, %v457_v3   ;;  %v400_v3 = vld [vmem:[%s2847_s29 + $0xd8] sm:$0xff]  ;;  %s2502_s18 = sshra.s32 %s2204_s16, 4  ;;  %s2503_s18 = int_to_ptr.hbm [resolvable:$true] %s2502_s18 }
 0x10b   : > { %v1772_v12 = vpack.c.b16 %v1760_v59, %v1759_v32  ;;  %v1837_v32 = vunpack.c.l.b16 %v1556_v16  ;;  %v1554_v59 = vpack.c.bf16 %v872_v53, %v872_v53  ;;  %s2504_s19 = scalar_lea.hbm %s2503_s18, 32  ;;  %p2509_p0 = scmp.lt.s32.totalorder %s2503_s18, %s3318_s6 }
 0x10c   : > { %v774_v25 = vpop.permute.xlu0 %773  ;;  %593 = vperm.xlu1 %2398, %v455_v50   ;;  %v1836_v50 = vunpack.c.l.b16 %v1555_v20  ;;  %p2505_p11 = scmp.ne.s32.totalorder %s2503_s18, %s2504_s19  ;;  %p2510_p1 = scmp.lt.s32.totalorder %s2508_s28, %s2504_s19 }
 0x10d   : > { %v875_v11 = vmul.f32 %v774_v25, %v427_v60  ;;  %1789 = vmatpush.bf16.msra.mxu2 %v1772_v12  ;;  %v1553_v12 = vpack.c.bf16 %v871_v49, %v871_v49  ;;  %v1529_v25 = vpack.c.bf16 %v847_v44, %v847_v44  ;;  %v1835_v28 = vunpack.c.l.b16 %v1554_v59  ;;  %v3047_v16 = vpop.permute.xlu1 %618 }
 0x10e   : > { %v1850_v4 = vpack.c.b16 %v1837_v32, %v1836_v50  ;;  %p2506_p12 = pnand %p2505_p11, %p2628_p5  ;;  %p2511_p2 = por %p2510_p1, %p2509_p0 }
 0x10f   : > { %v1557_v54 = vpack.c.bf16 %v875_v11, %v875_v11  ;;  %v1834_v24 = vunpack.c.l.b16 %v1553_v12  ;;  %v1684_v11 = vunpack.c.l.b16 %v1529_v25 }
 0x110   : > { %p2507_p13 = pneg %p2506_p12 }
 0x111   : > { %v1838_v56 = vunpack.c.l.b16 %v1557_v54  ;;  %v1849_v42 = vpack.c.b16 %v1835_v28, %v1834_v24 }
 0x112   : > { %588 = vperm.xlu2 %2399, %v454_v62   ;;  %p2512_p3 = pnand %p2511_p2, %p2507_p13 }
 0x113   : > { %v1851_v58 = vpack.c.b16 %v1839_v51, %v1838_v56 }
 0x114   : > { %v639_v60 = vpop.permute.xlu0 %638  ;;  %598 = vperm.xlu1 %2398, %v456_v7  }
 0x115   : > { %v848_v37 = vmul.f32 %v639_v60, %v400_v3  ;;  %1868 = vmatpush.bf16.msra.mxu3 %v1851_v58  ;;  %v3061_v44 = vpop.permute.xlu1 %663 }
 0x117   : > { %v1530_v29 = vpack.c.bf16 %v848_v37, %v848_v37 }
 0x119   : > { %v1685_v21 = vunpack.c.l.b16 %v1530_v29  ;;  %1869 = vmatpush.bf16.msra.mxu3 %v1850_v4 }
 0x11b   : > { %v1695_v33 = vpack.c.b16 %v1685_v21, %v1684_v11  ;;  %v409_v21 = vld [vmem:[%s2847_s29 + $0x120] sm:$0xff] }
 0x11d   : > { %1708 = vmatpush.bf16.msra.mxu1 %v1695_v33  ;;  %1870 = vmatpush.bf16.msra.mxu3 %v1849_v42  ;;  %v3075_v60 = vpop.permute.xlu1 %668 }
 0x13e   : > { %v1248_v53 = vpop.xlane.xlu0 %1247 }
 0x13f   : > { %v1288_v54 = vperm.slane %v1248_v53, 0 }
 0x141   : > { %v1300_v51 = vsub.f32 %v1260_v17, %v1288_v54  ;;  %v1302_v62 = vsub.f32 %v1262_v30, %v1288_v54  ;;  %v1298_v20 = vsub.f32 %v1258_v46, %v1288_v54  ;;  %v1296_v49 = vsub.f32 %v1256_v18, %v1288_v54 }
 0x143   : > { %v1333_v56 = vmul.f32 1.442695, %v1298_v20  ;;  %v1329_v3 = vmul.f32 1.442695, %v1296_v49  ;;  %v1337_v7 = vmul.f32 1.442695, %v1300_v51 }
 0x144   : > { %v1341_v32 = vmul.f32 1.442695, %v1302_v62 }
 0x145   : > { %2412 = vpow2.f32 %v1333_v56  ;;  %v1250_v14 = vpop.xlane.xlu2 %1249 }
 0x146   : > { %2414 = vpow2.f32 %v1329_v3  ;;  %v1290_v17 = vperm.slane %v1250_v14, 0  ;;  %v3090_v3 = vpop.permute.xlu1 %743 }
 0x147   : > { %2416 = vpow2.f32 %v1337_v7 }
 0x148   : > { %2418 = vpow2.f32 %v1341_v32  ;;  %v1304_v35 = vsub.f32 %v1264_v34, %v1290_v17  ;;  %v1306_v10 = vsub.f32 %v1266_v8, %v1290_v17  ;;  %v1308_v15 = vsub.f32 %v1268_v9, %v1290_v17 }
 0x149   : > { %v1310_v18 = vsub.f32 %v1270_v22, %v1290_v17 }
 0x14a   : > { %v1345_v48 = vmul.f32 1.442695, %v1304_v35  ;;  %v1349_v30 = vmul.f32 1.442695, %v1306_v10  ;;  %v1353_v59 = vmul.f32 1.442695, %v1308_v15 }
 0x14b   : > { %v2413_v46 = vpop.eup %2412  ;;  %v1357_v34 = vmul.f32 1.442695, %v1310_v18  ;;  %v410_v35 = vld [vmem:[%s2847_s29 + $0x128] sm:$0xff] }
 0x14c   : > { %v2415_v58 = vpop.eup %2414  ;;  %v1394_v41 = vadd.f32 0.0001, %v2413_v46  ;;  %2420 = vpow2.f32 %v1345_v48  ;;  %v398_v48 = vld [vmem:[%s2847_s29 + $0xc8] sm:$0xff] }
 0x14d   : > { %v2417_v50 = vpop.eup %2416  ;;  %v1392_v0 = vadd.f32 0.0001, %v2415_v58  ;;  %2422 = vpow2.f32 %v1349_v30 }
 0x14e   : > { %v2419_v8 = vpop.eup %2418  ;;  %v1426_v12 = vmul.f32 0.17677669, %v1394_v41  ;;  %v1396_v13 = vadd.f32 0.0001, %v2417_v50  ;;  %2424 = vpow2.f32 %v1353_v59 }
 0x14f   : > { %v1424_v9 = vmul.f32 0.17677669, %v1392_v0  ;;  %v1398_v26 = vadd.f32 0.0001, %v2419_v8  ;;  %2426 = vpow2.f32 %v1357_v34 }
 0x150   : > { %1457 = vadd.xlane.f32.xlu2 %v1426_v12  ;;  %v1488_v5 = vpack.c.bf16 %v1426_v12, %v1426_v12  ;;  %v3077_v22 = vmul.f32 0.17677669, %v1396_v13  ;;  %v846_v13 = vmul.f32 %v3029_v38, %v398_v48 }
 0x151   : > { %1455 = vadd.xlane.f32.xlu0 %v1424_v9  ;;  %v1487_v25 = vpack.c.bf16 %v1424_v9, %v1424_v9  ;;  %v684_v37 = vpop.permute.xlu0 %683  ;;  %v3079_v4 = vmul.f32 0.17677669, %v1398_v26  ;;  %v396_v9 = vld [vmem:[%s2847_s29 + $0xb8] sm:$0xff] }
 0x152   : > { %v1572_v28 = vunpack.c.l.b16 %v1488_v5  ;;  %v1489_v29 = vpack.c.bf16 %v3077_v22, %v3077_v22  ;;  %v2421_v24 = vpop.eup %2420  ;;  %v857_v7 = vmul.f32 %v684_v37, %v409_v21  ;;  %v1278_v21 = vsub.f32 %v3004_v1, %v2939_v57 }
 0x153   : > { %v1571_v11 = vunpack.c.l.b16 %v1487_v25  ;;  %v1490_v42 = vpack.c.bf16 %v3079_v4, %v3079_v4  ;;  %v2423_v33 = vpop.eup %2422  ;;  %v1400_v53 = vadd.f32 0.0001, %v2421_v24  ;;  %v395_v25 = vld [vmem:[%s2847_s29 + $0xb0] sm:$0xff]  ;;  %v1286_v57 = vsub.f32 %v3013_v2, %v2958_v55 }
 0x154   : > { %v3086_v54 = vunpack.c.l.b16 %v1489_v29  ;;  %v2425_v51 = vpop.eup %2424  ;;  %v1402_v20 = vadd.f32 0.0001, %v2423_v33  ;;  %v1539_v41 = vpack.c.bf16 %v857_v7, %v857_v7  ;;  %v844_v33 = vmul.f32 %v3047_v16, %v396_v9 }
 0x155   : > { %v1575_v62 = vpack.c.b16 %v1572_v28, %v1571_v11  ;;  %v3088_v49 = vunpack.c.l.b16 %v1490_v42  ;;  %v2427_v56 = vpop.eup %2426  ;;  %v1432_v32 = vmul.f32 0.17677669, %v1400_v53  ;;  %v1404_v14 = vadd.f32 0.0001, %v2425_v51  ;;  %v407_v42 = vld [vmem:[%s2847_s29 + $0x110] sm:$0xff]  ;;  %v397_v53 = vld [vmem:[%s2847_s29 + $0xc0] sm:$0xff] }
 0x156   : > { %v1434_v17 = vmul.f32 0.17677669, %v1402_v20  ;;  %v1406_v15 = vadd.f32 0.0001, %v2427_v56  ;;  %v1757_v29 = vunpack.c.l.b16 %v1539_v41  ;;  %v1528_v51 = vpack.c.bf16 %v846_v13, %v846_v13 }
 0x157   : > { %1635 = vmatmul.bf16.vlgmr.msra.gmra.mxu0 %v1575_v62  ;;  %v1576_v10 = vpack.c.b16 %v3088_v49, %v3086_v54  ;;  %v1491_v18 = vpack.c.bf16 %v1432_v32, %v1432_v32  ;;  %1463 = vadd.xlane.f32.xlu1 %v1432_v32  ;;  %v3095_v46 = vmul.f32 0.17677669, %v1404_v14  ;;  %v843_v62 = vmul.f32 %v3045_v43, %v395_v25  ;;  %v421_v25 = vld [vmem:[%s2847_s29 + $0x180] sm:$0xff] }
 0x158   : > { %v1492_v30 = vpack.c.bf16 %v1434_v17, %v1434_v17  ;;  %v3098_v58 = vmul.f32 0.17677669, %v1406_v15  ;;  %v855_v32 = vmul.f32 %v3025_v31, %v407_v42  ;;  %v1526_v43 = vpack.c.bf16 %v844_v33, %v844_v33 }
 0x159   : > { %1465 = vadd.xlane.f32.xlu0 %v1434_v17  ;;  %v689_v59 = vpop.permute.xlu0 %688  ;;  %v3100_v34 = vunpack.c.l.b16 %v1491_v18  ;;  %v1493_v0 = vpack.c.bf16 %v3095_v46, %v3095_v46  ;;  %v1683_v47 = vunpack.c.l.b16 %v1528_v51  ;;  %v854_v41 = vmul.f32 %v3075_v60, %v406_v36 }
 0x15a   : > { %v858_v50 = vmul.f32 %v689_v59, %v410_v35  ;;  %v3104_v8 = vunpack.c.l.b16 %v1492_v30  ;;  %v1494_v12 = vpack.c.bf16 %v3098_v58, %v3098_v58  ;;  %v1537_v31 = vpack.c.bf16 %v855_v32, %v855_v32  ;;  %v405_v59 = vld [vmem:[%s2847_s29 + $0x100] sm:$0xff] }
 0x15b   : > { %v3110_v5 = vunpack.c.l.b16 %v1493_v0  ;;  %v1681_v30 = vunpack.c.l.b16 %v1526_v43  ;;  %v1536_v42 = vpack.c.bf16 %v854_v41, %v854_v41  ;;  %v3157_v41 = vpop.f32.mrf.mxu0 }
 0x15c   : > { %v1540_v26 = vpack.c.bf16 %v858_v50, %v858_v50  ;;  %v1654_v37 = vpack.c.b16 %v3104_v8, %v3100_v34  ;;  %v3115_v28 = vunpack.c.l.b16 %v1494_v12  ;;  %v408_v50 = vld [vmem:[%s2847_s29 + $0x118] sm:$0xff] }
 0x15e   : > { %v1758_v24 = vunpack.c.l.b16 %v1540_v26  ;;  %v1252_v11 = vpop.xlane.xlu1 %1251  ;;  %v1655_v54 = vpack.c.b16 %v3115_v28, %v3110_v5 }
 0x15f   : > { %v1292_v38 = vperm.slane %v1252_v11, 0  ;;  %v1755_v11 = vunpack.c.l.b16 %v1537_v31 }
 0x160   : > { %v1771_v20 = vpack.c.b16 %v1758_v24, %v1757_v29 }
 0x161   : > { %v624_v49 = vpop.permute.xlu0 %623  ;;  %v1316_v56 = vsub.f32 %v1276_v40, %v1292_v38  ;;  %v1314_v1 = vsub.f32 %v1274_v27, %v1292_v38  ;;  %v1312_v16 = vsub.f32 %v1272_v23, %v1292_v38  ;;  %v1318_v7 = vsub.f32 %v1278_v21, %v1292_v38 }
 0x162   : > { %v845_v14 = vmul.f32 %v624_v49, %v397_v53  ;;  %1790 = vmatpush.bf16.msra.mxu2 %v1771_v20  ;;  %v1525_v27 = vpack.c.bf16 %v843_v62, %v843_v62 }
 0x163   : > { %v1369_v17 = vmul.f32 1.442695, %v1316_v56  ;;  %v1365_v35 = vmul.f32 1.442695, %v1314_v1  ;;  %v1361_v15 = vmul.f32 1.442695, %v1312_v16 }
 0x164   : > { %v1527_v40 = vpack.c.bf16 %v845_v14, %v845_v14  ;;  %v1373_v18 = vmul.f32 1.442695, %v1318_v7  ;;  %v1680_v13 = vunpack.c.l.b16 %v1525_v27  ;;  %v393_v56 = vld [vmem:[%s2847_s29 + $0xa0] sm:$0xff]  ;;  %v422_v7 = vld [vmem:[%s2847_s29 + $0x188] sm:$0xff]  ;;  %v1754_v14 = vunpack.c.l.b16 %v1536_v42 }
 0x165   : > { %v1254_v48 = vpop.xlane.xlu2 %1253  ;;  %2428 = vpow2.f32 %v1369_v17 }
 0x166   : > { %v1682_v45 = vunpack.c.l.b16 %v1527_v40  ;;  %v1294_v23 = vperm.slane %v1254_v48, 0  ;;  %2430 = vpow2.f32 %v1365_v35  ;;  %v1693_v21 = vpack.c.b16 %v1681_v30, %v1680_v13 }
 0x167   : > { %1640 = vmatmul.bf16.gmra.mxu0 %v1576_v10  ;;  %2432 = vpow2.f32 %v1361_v15  ;;  %v853_v10 = vmul.f32 %v3061_v44, %v405_v59 }
 0x168   : > { %v1694_v0 = vpack.c.b16 %v1683_v47, %v1682_v45  ;;  %v1322_v12 = vsub.f32 %v1282_v61, %v1294_v23  ;;  %v1320_v2 = vsub.f32 %v1280_v6, %v1294_v23  ;;  %2434 = vpow2.f32 %v1373_v18 }
 0x169   : > { %v679_v9 = vpop.permute.xlu0 %678  ;;  %v1324_v26 = vsub.f32 %v1284_v52, %v1294_v23  ;;  %v1326_v60 = vsub.f32 %v1286_v57, %v1294_v23  ;;  %v869_v52 = vmul.f32 %v3090_v3, %v421_v25  ;;  %v1535_v51 = vpack.c.bf16 %v853_v10, %v853_v10 }
 0x16a   : > { %v1381_v29 = vmul.f32 1.442695, %v1322_v12  ;;  %v856_v24 = vmul.f32 %v679_v9, %v408_v50  ;;  %1709 = vmatpush.bf16.msra.mxu1 %v1694_v0  ;;  %v1377_v19 = vmul.f32 1.442695, %v1320_v2  ;;  %v394_v2 = vld [vmem:[%s2847_s29 + $0xa8] sm:$0xff] }
 0x16b   : > { %v2429_v61 = vpop.eup %2428  ;;  %v1385_v63 = vmul.f32 1.442695, %v1324_v26  ;;  %v1389_v38 = vmul.f32 1.442695, %v1326_v60  ;;  %v1551_v35 = vpack.c.bf16 %v869_v52, %v869_v52  ;;  %v1753_v47 = vunpack.c.l.b16 %v1535_v51  ;;  %v2484_v51 = vld [vmem:[%s2653_s17 + $0x8] sm:$0xff] }
 0x16c   : > { %v2431_v6 = vpop.eup %2430  ;;  %2436 = vpow2.f32 %v1381_v29  ;;  %v1538_v33 = vpack.c.bf16 %v856_v24, %v856_v24  ;;  %v1412_v55 = vadd.f32 0.0001, %v2429_v61 }
 0x16d   : > { %v2433_v39 = vpop.eup %2432  ;;  %v1410_v44 = vadd.f32 0.0001, %v2431_v6  ;;  %2438 = vpow2.f32 %v1377_v19  ;;  %v604_v1 = vpop.permute.xlu2 %603  ;;  %v1769_v50 = vpack.c.b16 %v1754_v14, %v1753_v47  ;;  %v1832_v26 = vunpack.c.l.b16 %v1551_v35  ;;  %v389_v47 = vld [vmem:[%s2847_s29 + $0x80] sm:$0xff] }
 0x16e   : > { %v2435_v53 = vpop.eup %2434  ;;  %v1756_v62 = vunpack.c.l.b16 %v1538_v33  ;;  %1710 = vmatpush.bf16.msra.mxu1 %v1693_v21  ;;  %v1444_v20 = vmul.f32 0.17677669, %v1412_v55  ;;  %v1408_v49 = vadd.f32 0.0001, %v2433_v39  ;;  %2440 = vpow2.f32 %v1385_v63 }
 0x16f   : > { %v1442_v16 = vmul.f32 0.17677669, %v1410_v44  ;;  %v1414_v32 = vadd.f32 0.0001, %v2435_v53  ;;  %2442 = vpow2.f32 %v1389_v38  ;;  %v841_v27 = vmul.f32 %v604_v1, %v393_v56 }
 0x170   : > { %v1770_v43 = vpack.c.b16 %v1756_v62, %v1755_v11  ;;  %1475 = vadd.xlane.f32.xlu2 %v1444_v20  ;;  %v1497_v17 = vpack.c.bf16 %v1444_v20, %v1444_v20  ;;  %v1440_v3 = vmul.f32 0.17677669, %v1408_v49  ;;  %v3162_v11 = vpop.f32.mrf.mxu2  ;;  %v1113_v62 = vmul.f32 %v2484_v51, %v2484_v51 }
 0x171   : > { %1473 = vadd.xlane.f32.xlu0 %v1442_v16  ;;  %v1496_v15 = vpack.c.bf16 %v1442_v16, %v1442_v16  ;;  %v749_v36 = vpop.permute.xlu0 %748  ;;  %v1446_v40 = vmul.f32 0.17677669, %v1414_v32  ;;  %v1523_v25 = vpack.c.bf16 %v841_v27, %v841_v27 }
 0x172   : > { %v2437_v18 = vpop.eup %2436  ;;  %1471 = vadd.xlane.f32.xlu1 %v1440_v3  ;;  %v1495_v48 = vpack.c.bf16 %v1440_v3, %v1440_v3  ;;  %v870_v57 = vmul.f32 %v749_v36, %v422_v7  ;;  %1791 = vmatpush.bf16.msra.mxu2 %v1770_v43  ;;  %v3155_v59 = vunpack.c.l.b16 %v1497_v17  ;;  %v3168_v7 = vpop.f32.mrf.mxu0  ;;  %v391_v36 = vld [vmem:[%s2847_s29 + $0x90] sm:$0xff] }
 0x173   : > { %v2439_v45 = vpop.eup %2438  ;;  %v1730_v23 = vunpack.c.l.b16 %v1496_v15  ;;  %v1418_v31 = vadd.f32 0.0001, %v2437_v18  ;;  %v1498_v30 = vpack.c.bf16 %v1446_v40, %v1446_v40  ;;  %v1678_v56 = vunpack.c.l.b16 %v1523_v25 }
 0x174   : > { %v1729_v0 = vunpack.c.l.b16 %v1495_v48  ;;  %v1552_v12 = vpack.c.bf16 %v870_v57, %v870_v57  ;;  %v1416_v13 = vadd.f32 0.0001, %v2439_v45  ;;  %v2441_v9 = vpop.eup %2440  ;;  %v390_v45 = vld [vmem:[%s2847_s29 + $0x88] sm:$0xff] }
 0x175   : > { %v1450_v60 = vmul.f32 0.17677669, %v1418_v31  ;;  %v3160_v10 = vunpack.c.l.b16 %v1498_v30  ;;  %v2443_v21 = vpop.eup %2442  ;;  %v1420_v42 = vadd.f32 0.0001, %v2441_v9  ;;  %v392_v31 = vld [vmem:[%s2847_s29 + $0x98] sm:$0xff]  ;;  %v1175_v30 = vmax.f32 %v3157_v41, %v3168_v7 }
 0x176   : > { %v1733_v29 = vpack.c.b16 %v1730_v23, %v1729_v0  ;;  %v1833_v24 = vunpack.c.l.b16 %v1552_v12  ;;  %v609_v19 = vpop.permute.xlu1 %608  ;;  %1792 = vmatpush.bf16.msra.mxu2 %v1769_v50  ;;  %v1448_v61 = vmul.f32 0.17677669, %v1416_v13  ;;  %v1422_v52 = vadd.f32 0.0001, %v2443_v21  ;;  %v589_v23 = vpop.permute.xlu2 %588 }
 0x177   : > { %v842_v63 = vmul.f32 %v609_v19, %v394_v2  ;;  %v1500_v6 = vpack.c.bf16 %v1450_v60, %v1450_v60  ;;  %v1734_v33 = vpack.c.b16 %v3160_v10, %v3155_v59  ;;  %v1452_v53 = vmul.f32 0.17677669, %v1420_v42  ;;  %v2485_v59 = vld [vmem:[%s2653_s17] sm:$0xff] }
 0x178   : > { %v1848_v55 = vpack.c.b16 %v1833_v24, %v1832_v26  ;;  %v1499_v39 = vpack.c.bf16 %v1448_v61, %v1448_v61  ;;  %1479 = vadd.xlane.f32.xlu2 %v1448_v61  ;;  %v1454_v49 = vmul.f32 0.17677669, %v1422_v52  ;;  %v3170_v15 = vpop.f32.mrf.mxu2  ;;  %v1111_v50 = vmul.f32 %v2485_v59, %v2485_v59 }
 0x179   : > { %v1524_v44 = vpack.c.bf16 %v842_v63, %v842_v63  ;;  %v1809_v38 = vunpack.c.l.b16 %v1500_v6  ;;  %1461 = vadd.xlane.f32.xlu0 %v3079_v4  ;;  %1793 = vmatmul.bf16.vlgmr.msra.gmra.mxu2 %v1733_v29  ;;  %v1501_v16 = vpack.c.bf16 %v1452_v53, %v1452_v53  ;;  %v1131_v4 = vrot.slane %v1113_v62, 4  ;;  %v584_v27 = vpop.permute.xlu0 %583 }
 0x17a   : > { %v1808_v20 = vunpack.c.l.b16 %v1499_v39  ;;  %1477 = vadd.xlane.f32.xlu1 %v1446_v40  ;;  %1871 = vmatpush.bf16.msra.mxu3 %v1848_v55  ;;  %v1502_v14 = vpack.c.bf16 %v1454_v49, %v1454_v49  ;;  %v3175_v57 = vpop.f32.mrf.mxu0  ;;  %v837_v0 = vmul.f32 %v584_v27, %v389_v47  ;;  %v838_v13 = vmul.f32 %v589_v23, %v390_v45 }
 0x17b   : > { %v1679_v1 = vunpack.c.l.b16 %v1524_v44  ;;  %v1810_v17 = vunpack.c.l.b16 %v1501_v16  ;;  %v1132_v18 = vadd.f32 %v1131_v4, %v1113_v62  ;;  %v1176_v10 = vmax.f32 %v1175_v30, %v3175_v57 }
 0x17c   : > { %v1812_v32 = vpack.c.b16 %v1809_v38, %v1808_v20  ;;  %v1811_v35 = vunpack.c.l.b16 %v1502_v14  ;;  %v1119_v25 = vrot.slane %v1111_v50, 4  ;;  %v1519_v29 = vpack.c.bf16 %v837_v0, %v837_v0 }
 0x17d   : > { %v1692_v43 = vpack.c.b16 %v1679_v1, %v1678_v56  ;;  %v1133_v12 = vrot.slane %v1132_v18, 2  ;;  %v1520_v61 = vpack.c.bf16 %v838_v13, %v838_v13 }
 0x17e   : > { %1872 = vmatmul.bf16.vlgmr.msra.gmra.mxu3 %v1812_v32  ;;  %v594_v3 = vpop.permute.xlu1 %593  ;;  %v1813_v40 = vpack.c.b16 %v1811_v35, %v1810_v17  ;;  %v1120_v39 = vadd.f32 %v1119_v25, %v1111_v50  ;;  %v1674_v52 = vunpack.c.l.b16 %v1519_v29 }
 0x17f   : > { %1711 = vmatpush.bf16.msra.mxu1 %v1692_v43  ;;  %v839_v48 = vmul.f32 %v594_v3, %v391_v36  ;;  %v1134_v19 = vadd.f32 %v1133_v12, %v1132_v18  ;;  %v1675_v51 = vunpack.c.l.b16 %v1520_v61  ;;  %v2486_v18 = vld [vmem:[%s2653_s17 + $0x18] sm:$0xff] }
 0x180   : > { %1467 = vadd.xlane.f32.xlu2 %v3095_v46  ;;  %v3182_v2 = vpop.f32.mrf.mxu2  ;;  %v1117_v47 = vmul.f32 %v2486_v18, %v2486_v18 }
 0x181   : > { %1483 = vadd.xlane.f32.xlu0 %v1452_v53  ;;  %v1521_v9 = vpack.c.bf16 %v839_v48, %v839_v48  ;;  %v1690_v20 = vpack.c.b16 %v1675_v51, %v1674_v52 }
 0x182   : > { %1481 = vadd.xlane.f32.xlu1 %v1450_v60  ;;  %v1193_v60 = vmax.f32 %v3162_v11, %v3170_v15  ;;  %v3189_v42 = vpop.f32.mrf.mxu0  ;;  %v1155_v59 = vrot.slane %v1117_v47, 4 }
 0x183   : > { %v1676_v21 = vunpack.c.l.b16 %v1521_v9  ;;  %v1177_v55 = vmax.f32 %v1176_v10, %v3189_v42 }
 0x184   : > { %v1194_v6 = vmax.f32 %v1193_v60, %v3182_v2  ;;  %v1156_v13 = vadd.f32 %v1155_v59, %v1117_v47 }
 0x185   : > { %v1178_v38 = vrot.slane %v1177_v55, 4 }
 0x186   : > { %v599_v46 = vpop.permute.xlu1 %598 }
 0x187   : > { %v840_v26 = vmul.f32 %v599_v46, %v392_v31 }
 0x188   : > { %1485 = vadd.xlane.f32.xlu2 %v1454_v49  ;;  %v991_v53 = vpop.f32.mrf.mxu2  ;;  %v1179_v49 = vmax.f32 %v1177_v55, %v1178_v38 }
 0x189   : > { %v1522_v24 = vpack.c.bf16 %v840_v26, %v840_v26  ;;  %1798 = vmatmul.bf16.gmra.mxu2 %v1734_v33  ;;  %v1135_v33 = vrot.slane %v1134_v19, 1  ;;  %v1195_v62 = vmax.f32 %v1194_v6, %v991_v53 }
 0x18a   : > { %1459 = vadd.xlane.f32.xlu1 %v3077_v22  ;;  %v1121_v22 = vrot.slane %v1120_v39, 2  ;;  %v3193_v32 = vpop.f32.mrf.mxu0  ;;  %v1180_v43 = vrot.slane %v1179_v49, 2 }
 0x18b   : > { %v1677_v63 = vunpack.c.l.b16 %v1522_v24  ;;  %v1196_v56 = vrot.slane %v1195_v62, 4  ;;  %v1136_v1 = vadd.f32 %v1135_v33, %v1134_v19  ;;  %v1157_v24 = vrot.slane %v1156_v13, 2 }
 0x18c   : > { %v1122_v14 = vadd.f32 %v1121_v22, %v1120_v39 }
 0x18d   : > { %v1691_v44 = vpack.c.b16 %v1677_v63, %v1676_v21  ;;  %v1197_v16 = vmax.f32 %v1195_v62, %v1196_v56  ;;  %v1169_v3 = vmul.f32 0.17677669, %v1136_v1 }
 0x18e   : > { %1877 = vmatmul.bf16.gmra.mxu3 %v1813_v40  ;;  %v1123_v36 = vrot.slane %v1122_v14, 1  ;;  %v1181_v40 = vmax.f32 %v1179_v49, %v1180_v43 }
 0x18f   : > { %1712 = vmatpush.bf16.msra.mxu1 %v1691_v44  ;;  %v1198_v17 = vrot.slane %v1197_v16, 2  ;;  %v1269_v48 = vsub.f32 %v991_v53, %v1169_v3  ;;  %v1267_v9 = vsub.f32 %v3182_v2, %v1169_v3  ;;  %v1263_v2 = vsub.f32 %v3162_v11, %v1169_v3 }
 0x190   : > { %v3198_v4 = vpop.f32.mrf.mxu2  ;;  %v1124_v23 = vadd.f32 %v1123_v36, %v1122_v14  ;;  %v1182_v31 = vrot.slane %v1181_v40, 1  ;;  %v1265_v61 = vsub.f32 %v3170_v15, %v1169_v3  ;;  %v1158_v44 = vadd.f32 %v1157_v24, %v1156_v13 }
 0x191   : > { %v1199_v35 = vmax.f32 %v1197_v16, %v1198_v17 }
 0x192   : > { %1469 = vadd.xlane.f32.xlu1 %v3098_v58  ;;  %v3201_v45 = vpop.f32.mrf.mxu0  ;;  %v3206_v0 = vmul.f32 0.17677669, %v1124_v23  ;;  %v1183_v12 = vmax.f32 %v1181_v40, %v1182_v31  ;;  %v1159_v49 = vrot.slane %v1158_v44, 1 }
 0x193   : > { %1713 = vmatpush.bf16.msra.mxu1 %v1690_v20  ;;  %v1200_v58 = vrot.slane %v1199_v35, 1  ;;  %v1211_v29 = vmax.f32 %v3193_v32, %v3201_v45 }
 0x194   : > { %v1261_v10 = vsub.f32 %v3189_v42, %v3206_v0  ;;  %v3213_v25 = vperm.slane %v1183_v12, 0  ;;  %v1160_v36 = vadd.f32 %v1159_v49, %v1158_v44  ;;  %v1259_v18 = vsub.f32 %v3175_v57, %v3206_v0 }
 0x195   : > { %v1201_v27 = vmax.f32 %v1199_v35, %v1200_v58  ;;  %v1257_v57 = vsub.f32 %v3168_v7, %v3206_v0 }
 0x196   : > { %1714 = vmatmul.bf16.vlgmr.msra.gmra.mxu1 %v1654_v37  ;;  %v2487_v37 = vld [vmem:[%s2653_s17 + $0x10] sm:$0xff]  ;;  %v1301_v55 = vsub.f32 %v1261_v10, %v3213_v25  ;;  %v3236_v12 = vmul.f32 0.17677669, %v1160_v36  ;;  %s311_s17 = scalar_lea.vmem [#allocation2], %s2315_s10 }
 0x197   : > { %v1289_v30 = vperm.slane %v1201_v27, 0  ;;  %v1115_v50 = vmul.f32 %v2487_v37, %v2487_v37  ;;  %s2201_s15 = sshll.u32 %s311_s17, 4  ;;  %s2202_s15 = int_to_ptr.vmem [resolvable:$true] %s2201_s15 }
 0x198   : > { %v3203_v34 = vpop.f32.mrf.mxu2  ;;  %v1339_v53 = vmul.f32 1.442695, %v1301_v55 }
 0x199   : > { %v1309_v8 = vsub.f32 %v1269_v48, %v1289_v30  ;;  %v1143_v60 = vrot.slane %v1115_v50, 4  ;;  %v1229_v21 = vmax.f32 %v3198_v4, %v3203_v34  ;;  %v1307_v63 = vsub.f32 %v1267_v9, %v1289_v30 }
 0x19a   : > { %v3209_v26 = vpop.f32.mrf.mxu0  ;;  %v1305_v11 = vsub.f32 %v1265_v61, %v1289_v30 }
 0x19b   : > { %v1355_v46 = vmul.f32 1.442695, %v1309_v8  ;;  %v1144_v42 = vadd.f32 %v1143_v60, %v1115_v50  ;;  %v1212_v39 = vmax.f32 %v1211_v29, %v3209_v26  ;;  %v1351_v52 = vmul.f32 1.442695, %v1307_v63 }
 0x19c   : > { %v1347_v20 = vmul.f32 1.442695, %v1305_v11  ;;  %v1299_v29 = vsub.f32 %v1259_v18, %v3213_v25  ;;  %v1281_v18 = vsub.f32 %v3203_v34, %v3236_v12 }
 0x19d   : > { %2444 = vpow2.f32 %v1355_v46  ;;  %v1145_v15 = vrot.slane %v1144_v42, 2 }
 0x19e   : > { %2446 = vpow2.f32 %v1351_v52 }
 0x19f   : > { %v1146_v14 = vadd.f32 %v1145_v15, %v1144_v42 }
 0x1a0   : > { %v3220_v19 = vpop.f32.mrf.mxu2 }
 0x1a1   : > { %v1230_v28 = vmax.f32 %v1229_v21, %v3220_v19  ;;  %v1147_v48 = vrot.slane %v1146_v14, 1 }
 0x1a2   : > { %v3229_v38 = vpop.f32.mrf.mxu0 }
 0x1a3   : > { %v2445_v6 = vpop.eup %2444  ;;  %v1213_v51 = vmax.f32 %v1212_v39, %v3229_v38  ;;  %v1148_v24 = vadd.f32 %v1147_v48, %v1146_v14 }
 0x1a4   : > { %v1405_v5 = vadd.f32 0.0001, %v2445_v6  ;;  %v2447_v16 = vpop.eup %2446  ;;  %v1335_v6 = vmul.f32 1.442695, %v1299_v29 }
 0x1a5   : > { %v1214_v56 = vrot.slane %v1213_v51, 4  ;;  %v1403_v35 = vadd.f32 0.0001, %v2447_v16 }
 0x1a6   : > { %1719 = vmatmul.bf16.gmra.mxu1 %v1655_v54  ;;  %v1303_v54 = vsub.f32 %v1263_v2, %v1289_v30  ;;  %v1437_v62 = vmul.f32 0.17677669, %v1405_v5  ;;  %v1255_v30 = vsub.f32 %v3157_v41, %v3206_v0  ;;  %v1297_v0 = vsub.f32 %v1257_v57, %v3213_v25 }
 0x1a7   : > { %v1215_v43 = vmax.f32 %v1213_v51, %v1214_v56  ;;  %v1435_v47 = vmul.f32 0.17677669, %v1403_v35  ;;  %v1283_v56 = vsub.f32 %v3220_v19, %v3236_v12 }
 0x1a8   : > { %v1343_v33 = vmul.f32 1.442695, %v1303_v54  ;;  %v1089_v22 = vpop.f32.mrf.mxu2  ;;  %v1922_v3 = vpack.c.bf16 %v1437_v62, %v1437_v62  ;;  %v1295_v7 = vsub.f32 %v1255_v30, %v3213_v25  ;;  %v1331_v11 = vmul.f32 1.442695, %v1297_v0 }
 0x1a9   : > { %v1231_v1 = vmax.f32 %v1230_v28, %v1089_v22  ;;  %v1216_v40 = vrot.slane %v1215_v43, 2  ;;  %v1921_v8 = vpack.c.bf16 %v1435_v47, %v1435_v47  ;;  %v1285_v39 = vsub.f32 %v1089_v22, %v3236_v12 }
 0x1aa   : > { %2448 = vpow2.f32 %v1343_v33  ;;  %v2024_v59 = vunpack.c.l.b16 %v1922_v3  ;;  %v1327_v54 = vmul.f32 1.442695, %v1295_v7  ;;  %v3244_v33 = vmul.f32 0.17677669, %v1148_v24 }
 0x1ab   : > { %2450 = vpow2.f32 %v1347_v20  ;;  %v1232_v17 = vrot.slane %v1231_v1, 4  ;;  %v1217_v46 = vmax.f32 %v1215_v43, %v1216_v40  ;;  %v2023_v60 = vunpack.c.l.b16 %v1921_v8 }
 0x1ac   : > { %2452 = vpow2.f32 %v1339_v53 }
 0x1ad   : > { %v1233_v58 = vmax.f32 %v1231_v1, %v1232_v17  ;;  %v2026_v21 = vpack.c.b16 %v2024_v59, %v2023_v60  ;;  %v1218_v42 = vrot.slane %v1217_v46, 1  ;;  %2454 = vpow2.f32 %v1335_v6 }
 0x1ae   : > { %2456 = vpow2.f32 %v1327_v54  ;;  %v1277_v1 = vsub.f32 %v3229_v38, %v3244_v33 }
 0x1af   : > { %v1234_v23 = vrot.slane %v1233_v58, 2  ;;  %2038 = vmatpush.bf16.msrb.mxu1 %v2026_v21  ;;  %v1219_v62 = vmax.f32 %v1217_v46, %v1218_v42  ;;  %2458 = vpow2.f32 %v1331_v11  ;;  %v1271_v42 = vsub.f32 %v3193_v32, %v3244_v33 }
 0x1b0   : > { %v2449_v27 = vpop.eup %2448 }
 0x1b1   : > { %v2451_v31 = vpop.eup %2450  ;;  %v1399_v37 = vadd.f32 0.0001, %v2449_v27  ;;  %v1235_v13 = vmax.f32 %v1233_v58, %v1234_v23  ;;  %v1291_v16 = vperm.slane %v1219_v62, 0  ;;  %v1279_v58 = vsub.f32 %v3198_v4, %v3236_v12 }
 0x1b2   : > { %v2453_v50 = vpop.eup %2452  ;;  %v1401_v9 = vadd.f32 0.0001, %v2451_v31 }
 0x1b3   : > { %v1431_v10 = vmul.f32 0.17677669, %v1399_v37  ;;  %v1236_v2 = vrot.slane %v1235_v13, 1  ;;  %v1397_v41 = vadd.f32 0.0001, %v2453_v50  ;;  %v2455_v20 = vpop.eup %2454  ;;  %v1317_v19 = vsub.f32 %v1277_v1, %v1291_v16 }
 0x1b4   : > { %v1433_v61 = vmul.f32 0.17677669, %v1401_v9  ;;  %v1395_v25 = vadd.f32 0.0001, %v2455_v20  ;;  %v2457_v43 = vpop.eup %2456 }
 0x1b5   : > { %v1919_v63 = vpack.c.bf16 %v1431_v10, %v1431_v10  ;;  %v1237_v55 = vmax.f32 %v1235_v13, %v1236_v2  ;;  %v1429_v15 = vmul.f32 0.17677669, %v1397_v41  ;;  %v1391_v35 = vadd.f32 0.0001, %v2457_v43  ;;  %v2459_v40 = vpop.eup %2458 }
 0x1b6   : > { %v1920_v52 = vpack.c.bf16 %v1433_v61, %v1433_v61  ;;  %v1427_v14 = vmul.f32 0.17677669, %v1395_v25  ;;  %v1393_v48 = vadd.f32 0.0001, %v2459_v40  ;;  %v1371_v46 = vmul.f32 1.442695, %v1317_v19 }
 0x1b7   : > { %v2021_v44 = vunpack.c.l.b16 %v1919_v63  ;;  %v1293_v5 = vperm.slane %v1237_v55, 0  ;;  %v1918_v49 = vpack.c.bf16 %v1429_v15, %v1429_v15  ;;  %v1423_v23 = vmul.f32 0.17677669, %v1391_v35 }
 0x1b8   : > { %v2022_v28 = vunpack.c.l.b16 %v1920_v52  ;;  %v1917_v3 = vpack.c.bf16 %v1427_v14, %v1427_v14  ;;  %v1425_v59 = vmul.f32 0.17677669, %v1393_v48  ;;  %v1275_v2 = vsub.f32 %v3209_v26, %v3244_v33 }
 0x1b9   : > { %v1325_v53 = vsub.f32 %v1285_v39, %v1293_v5  ;;  %v1966_v17 = vunpack.c.l.b16 %v1918_v49  ;;  %v1323_v36 = vsub.f32 %v1283_v56, %v1293_v5  ;;  %v1915_v8 = vpack.c.bf16 %v1423_v23, %v1423_v23 }
 0x1ba   : > { %v2025_v51 = vpack.c.b16 %v2022_v28, %v2021_v44  ;;  %v1965_v27 = vunpack.c.l.b16 %v1917_v3  ;;  %v1319_v37 = vsub.f32 %v1279_v58, %v1293_v5  ;;  %v1321_v50 = vsub.f32 %v1281_v18, %v1293_v5 }
 0x1bb   : > { %v1387_v22 = vmul.f32 1.442695, %v1325_v53  ;;  %v1383_v38 = vmul.f32 1.442695, %v1323_v36  ;;  %v1916_v13 = vpack.c.bf16 %v1425_v59, %v1425_v59  ;;  %v1963_v4 = vunpack.c.l.b16 %v1915_v8 }
 0x1bc   : > { %2039 = vmatpush.bf16.msrb.mxu1 %v2025_v51  ;;  %v1968_v30 = vpack.c.b16 %v1966_v17, %v1965_v27  ;;  %v1375_v57 = vmul.f32 1.442695, %v1319_v37  ;;  %v1379_v34 = vmul.f32 1.442695, %v1321_v50  ;;  %v1273_v52 = vsub.f32 %v3201_v45, %v3244_v33 }
 0x1bd   : > { %2460 = vpow2.f32 %v1387_v22  ;;  %v1964_v12 = vunpack.c.l.b16 %v1916_v13  ;;  %v1315_v0 = vsub.f32 %v1275_v2, %v1291_v16  ;;  %v1311_v51 = vsub.f32 %v1271_v42, %v1291_v16 }
 0x1be   : > { %2462 = vpow2.f32 %v1383_v38  ;;  %1981 = vmatpush.bf16.msrb.mxu0 %v1968_v30  ;;  %v1313_v62 = vsub.f32 %v1273_v52, %v1291_v16 }
 0x1bf   : > { %2464 = vpow2.f32 %v1375_v57  ;;  %v1967_v10 = vpack.c.b16 %v1964_v12, %v1963_v4  ;;  %v1367_v26 = vmul.f32 1.442695, %v1315_v0  ;;  %v1359_v20 = vmul.f32 1.442695, %v1311_v51 }
 0x1c0   : > { %2466 = vpow2.f32 %v1379_v34  ;;  %v1363_v49 = vmul.f32 1.442695, %v1313_v62 }
 0x1c1   : > { %2468 = vpow2.f32 %v1371_v46 }
 0x1c2   : > { %1982 = vmatpush.bf16.msrb.mxu0 %v1967_v10  ;;  %2470 = vpow2.f32 %v1367_v26 }
 0x1c3   : > { %v2461_v47 = vpop.eup %2460  ;;  %2472 = vpow2.f32 %v1359_v20  ;;  %v1458_v59 = vpop.xlane.xlu2 %1457 }
 0x1c4   : > { %v1421_v31 = vadd.f32 0.0001, %v2461_v47  ;;  %v2463_v60 = vpop.eup %2462  ;;  %2474 = vpow2.f32 %v1363_v49 }
 0x1c5   : > { %v1419_v24 = vadd.f32 0.0001, %v2463_v60  ;;  %v2465_v41 = vpop.eup %2464 }
 0x1c6   : > { %v1453_v9 = vmul.f32 0.17677669, %v1421_v31  ;;  %v2467_v6 = vpop.eup %2466  ;;  %v1415_v55 = vadd.f32 0.0001, %v2465_v41  ;;  %v1456_v31 = vpop.xlane.xlu0 %1455 }
 0x1c7   : > { %v1451_v61 = vmul.f32 0.17677669, %v1419_v24  ;;  %v2469_v39 = vpop.eup %2468  ;;  %v1417_v7 = vadd.f32 0.0001, %v2467_v6 }
 0x1c8   : > { %v1930_v29 = vpack.c.bf16 %v1453_v9, %v1453_v9  ;;  %v1447_v5 = vmul.f32 0.17677669, %v1415_v55  ;;  %v1413_v11 = vadd.f32 0.0001, %v2469_v39  ;;  %v2471_v33 = vpop.eup %2470 }
 0x1c9   : > { %v1929_v63 = vpack.c.bf16 %v1451_v61, %v1451_v61  ;;  %v1449_v54 = vmul.f32 0.17677669, %v1417_v7  ;;  %v1411_v1 = vadd.f32 0.0001, %v2471_v33  ;;  %v2473_v43 = vpop.eup %2472 }
 0x1ca   : > { %v2138_v21 = vunpack.c.l.b16 %v1930_v29  ;;  %v1927_v15 = vpack.c.bf16 %v1447_v5, %v1447_v5  ;;  %v1445_v56 = vmul.f32 0.17677669, %v1413_v11  ;;  %v2475_v17 = vpop.eup %2474  ;;  %v1407_v36 = vadd.f32 0.0001, %v2473_v43  ;;  %v1464_v48 = vpop.xlane.xlu1 %1463 }
 0x1cb   : > { %v2137_v44 = vunpack.c.l.b16 %v1929_v63  ;;  %v1928_v53 = vpack.c.bf16 %v1449_v54, %v1449_v54  ;;  %v1443_v14 = vmul.f32 0.17677669, %v1411_v1  ;;  %v1409_v40 = vadd.f32 0.0001, %v2475_v17 }
 0x1cc   : > { %v2135_v32 = vunpack.c.l.b16 %v1927_v15  ;;  %v1926_v25 = vpack.c.bf16 %v1445_v56, %v1445_v56  ;;  %v1439_v58 = vmul.f32 0.17677669, %v1407_v36 }
 0x1cd   : > { %v2140_v28 = vpack.c.b16 %v2138_v21, %v2137_v44  ;;  %v2136_v22 = vunpack.c.l.b16 %v1928_v53  ;;  %v1925_v35 = vpack.c.bf16 %v1443_v14, %v1443_v14  ;;  %v1441_v18 = vmul.f32 0.17677669, %v1409_v40 }
 0x1ce   : > { %v2081_v3 = vunpack.c.l.b16 %v1926_v25  ;;  %v1923_v47 = vpack.c.bf16 %v1439_v58, %v1439_v58  ;;  %v1466_v37 = vpop.xlane.xlu0 %1465 }
 0x1cf   : > { %2152 = vmatpush.bf16.msrb.mxu3 %v2140_v28  ;;  %v2139_v45 = vpack.c.b16 %v2136_v22, %v2135_v32  ;;  %v2080_v16 = vunpack.c.l.b16 %v1925_v35  ;;  %v1924_v27 = vpack.c.bf16 %v1441_v18, %v1441_v18 }
 0x1d0   : > { %v2078_v23 = vunpack.c.l.b16 %v1923_v47 }
 0x1d1   : > { %v2083_v19 = vpack.c.b16 %v2081_v3, %v2080_v16  ;;  %v2079_v38 = vunpack.c.l.b16 %v1924_v27 }
 0x1d3   : > { %2153 = vmatpush.bf16.msrb.mxu3 %v2139_v45  ;;  %2095 = vmatpush.bf16.msrb.mxu2 %v2083_v19  ;;  %v2082_v30 = vpack.c.b16 %v2079_v38, %v2078_v23 }
 0x1d4   : > { %v1636_v29 = vpop.f32.mrf.mxu0 }
 0x1d5   : > { %v1883_v20 = vsel %vm912_vm1, %v1636_v29, %v1456_v31 }
 0x1d6   : > { %v1899_v43 = vpack.c.bf16 %v1883_v20, %v1883_v20 }
 0x1d7   : > { %2096 = vmatpush.bf16.msrb.mxu2 %v2082_v30 }
 0x1dc   : > { %v1638_v54 = vpop.f32.mrf.mxu0 }
 0x1dd   : > { %v1884_v53 = vsel %vm912_vm1, %v1638_v54, %v1458_v59 }
 0x1de   : > { %v1900_v56 = vpack.c.bf16 %v1884_v53, %v1884_v53 }
 0x1e0   : > { %v1936_v58 = vunpack.c.l.b16 %v1900_v56 }
 0x1e3   : > { %v1476_v50 = vpop.xlane.xlu2 %1475 }
 0x1e4   : > { %v1474_v4 = vpop.xlane.xlu0 %1473  ;;  %v1641_v3 = vpop.f32.mrf.mxu0 }
 0x1e5   : > { %v1472_v8 = vpop.xlane.xlu1 %1471 }
 0x1eb   : > { %v1480_v34 = vpop.xlane.xlu2 %1479 }
 0x1ec   : > { %v1462_v6 = vpop.xlane.xlu0 %1461 }
 0x1ed   : > { %v1478_v13 = vpop.xlane.xlu1 %1477 }
 0x1f3   : > { %v1468_v0 = vpop.xlane.xlu2 %1467 }
 0x1f4   : > { %v1484_v51 = vpop.xlane.xlu0 %1483 }
 0x1f5   : > { %v1482_v2 = vpop.xlane.xlu1 %1481 }
 0x1fb   : > { %v1486_v33 = vpop.xlane.xlu2 %1485 }
 0x1fc   : > { %v1794_v46 = vpop.f32.mrf.mxu2 }
 0x1fd   : > { %v1891_v60 = vsel %vm912_vm1, %v1794_v46, %v1472_v8 }
 0x1fe   : > { %v1907_v61 = vpack.c.bf16 %v1891_v60, %v1891_v60 }
 0x200   : > { %v2050_v52 = vunpack.c.l.b16 %v1907_v61 }
 0x201   : > { %v1873_v9 = vpop.f32.mrf.mxu3 }
 0x202   : > { %v1895_v10 = vsel %vm912_vm1, %v1873_v9, %v1480_v34 }
 0x203   : > { %v1911_v41 = vpack.c.bf16 %v1895_v10, %v1895_v10 }
 0x204   : > { %v1796_v57 = vpop.f32.mrf.mxu2 }
 0x205   : > { %v1892_v12 = vsel %vm912_vm1, %v1796_v57, %v1474_v4  ;;  %v2107_v44 = vunpack.c.l.b16 %v1911_v41  ;;  %v1643_v4 = vpop.f32.mrf.mxu0 }
 0x206   : > { %v1908_v24 = vpack.c.bf16 %v1892_v12, %v1892_v12 }
 0x208   : > { %v2051_v42 = vunpack.c.l.b16 %v1908_v24 }
 0x209   : > { %v1875_v21 = vpop.f32.mrf.mxu3 }
 0x20a   : > { %v1896_v63 = vsel %vm912_vm1, %v1875_v21, %v1482_v2  ;;  %v2054_v5 = vpack.c.b16 %v2051_v42, %v2050_v52 }
 0x20b   : > { %v1912_v55 = vpack.c.bf16 %v1896_v63, %v1896_v63 }
 0x20c   : > { %v1799_v39 = vpop.f32.mrf.mxu2 }
 0x20d   : > { %v2108_v7 = vunpack.c.l.b16 %v1912_v55  ;;  %v1893_v32 = vsel %vm912_vm1, %v1799_v39, %v1476_v50  ;;  %v1460_v50 = vpop.xlane.xlu1 %1459 }
 0x20e   : > { %v1909_v25 = vpack.c.bf16 %v1893_v32, %v1893_v32  ;;  %v1885_v9 = vsel %vm912_vm1, %v1641_v3, %v1460_v50 }
 0x20f   : > { %v2111_v28 = vpack.c.b16 %v2108_v7, %v2107_v44  ;;  %v1901_v34 = vpack.c.bf16 %v1885_v9, %v1885_v9 }
 0x210   : > { %v2052_v19 = vunpack.c.l.b16 %v1909_v25 }
 0x211   : > { %v1878_v26 = vpop.f32.mrf.mxu3  ;;  %2400 = vxpose.binary.xlu0.c.b16.start [1/4] (short) (narrow) %v2111_v28, %v2054_v5, 16  ;;  %v1937_v2 = vunpack.c.l.b16 %v1901_v34 }
 0x212   : > { %v1897_v22 = vsel %vm912_vm1, %v1878_v26, %v1484_v51 }
 0x213   : > { %v1715_v11 = vpop.f32.mrf.mxu1  ;;  %v1913_v1 = vpack.c.bf16 %v1897_v22, %v1897_v22 }
 0x214   : > { %v1801_v15 = vpop.f32.mrf.mxu2  ;;  %v1887_v45 = vsel %vm912_vm1, %v1715_v11, %v1464_v48  ;;  %v1935_v48 = vunpack.c.l.b16 %v1899_v43 }
 0x215   : > { %v1894_v62 = vsel %vm912_vm1, %v1801_v15, %v1478_v13  ;;  %v1903_v35 = vpack.c.bf16 %v1887_v45, %v1887_v45  ;;  %v2109_v47 = vunpack.c.l.b16 %v1913_v1  ;;  %v1470_v60 = vpop.xlane.xlu1 %1469 }
 0x216   : > { %v1910_v49 = vpack.c.bf16 %v1894_v62, %v1894_v62  ;;  %v1939_v8 = vpack.c.b16 %v1936_v58, %v1935_v48 }
 0x217   : > { %v1993_v38 = vunpack.c.l.b16 %v1903_v35 }
 0x218   : > { %v2053_v36 = vunpack.c.l.b16 %v1910_v49 }
 0x219   : > { %v1880_v14 = vpop.f32.mrf.mxu3 }
 0x21a   : > { %v1898_v17 = vsel %vm912_vm1, %v1880_v14, %v1486_v33  ;;  %v2055_v31 = vpack.c.b16 %v2053_v36, %v2052_v19 }
 0x21b   : > { %v1914_v40 = vpack.c.bf16 %v1898_v17, %v1898_v17  ;;  %v1717_v16 = vpop.f32.mrf.mxu1 }
 0x21c   : > { %v1888_v18 = vsel %vm912_vm1, %v1717_v16, %v1466_v37  ;;  %v1886_v37 = vsel %vm912_vm1, %v1643_v4, %v1462_v6 }
 0x21d   : > { %v2110_v27 = vunpack.c.l.b16 %v1914_v40  ;;  %v1904_v23 = vpack.c.bf16 %v1888_v18, %v1888_v18  ;;  %v1902_v12 = vpack.c.bf16 %v1886_v37, %v1886_v37 }
 0x21f   : > { %v2112_v30 = vpack.c.b16 %v2110_v27, %v2109_v47  ;;  %v1994_v59 = vunpack.c.l.b16 %v1904_v23  ;;  %v1938_v41 = vunpack.c.l.b16 %v1902_v12 }
 0x221   : > { %v1997_v46 = vpack.c.b16 %v1994_v59, %v1993_v38  ;;  %2401 = vxpose.binary.xlu0.c.b16.end [2/4] (short) (narrow) %v2112_v30, %v2055_v31, 16  ;;  %v1940_v42 = vpack.c.b16 %v1938_v41, %v1937_v2 }
 0x223   : > { %v1720_v13 = vpop.f32.mrf.mxu1  ;;  %2404 = vxpose.binary.xlu2.c.b16.start [1/4] (short) (narrow) %v1997_v46, %v1939_v8, 16 }
 0x224   : > { %v1889_v57 = vsel %vm912_vm1, %v1720_v13, %v1468_v0 }
 0x225   : > { %v1905_v10 = vpack.c.bf16 %v1889_v57, %v1889_v57 }
 0x227   : > { %v1995_v21 = vunpack.c.l.b16 %v1905_v10 }
 0x22b   : > { %v1722_v29 = vpop.f32.mrf.mxu1 }
 0x22c   : > { %v1890_v24 = vsel %vm912_vm1, %v1722_v29, %v1470_v60 }
 0x22d   : > { %v1906_v61 = vpack.c.bf16 %v1890_v24, %v1890_v24 }
 0x22f   : > { %v1996_v63 = vunpack.c.l.b16 %v1906_v61 }
 0x231   : > { %v1998_v55 = vpack.c.b16 %v1996_v63, %v1995_v21 }
 0x233   : > { %2405 = vxpose.binary.xlu2.c.b16.end [2/4] (short) (narrow) %v1998_v55, %v1940_v42, 16 }
 0x2bd   : > { %v2402_v39 = vpop.trf.xlu0 }
 0x2be   : > { %2345 = vmatmul.msk.bf16.vlgmr.msrb.gmra.mxu2 %vm1971_vm2, %v2402_v39 }
 0x2c4   : > { %v2406_v6 = vpop.trf.xlu2 }
 0x2c5   : > { %v2403_v52 = vpop.trf.xlu0  ;;  %2343 = vmatmul.msk.bf16.vlgmr.msrb.gmra.mxu0 %vm1971_vm2, %v2406_v6 }
 0x2c6   : > { %2346 = vmatmul.msk.bf16.vlgmr.msrb.gmra.mxu3 %vm1971_vm2, %v2403_v52 }
 0x2cc   : > { %v2407_v44 = vpop.trf.xlu2 }
 0x2cd   : > { %2344 = vmatmul.msk.bf16.vlgmr.msrb.gmra.mxu1 %vm1971_vm2, %v2407_v44 }
 0x341   : > { %v2098_v7 = vpop.f32.mrf.mxu2 }
 0x342   : > { %v1984_v0 = vpop.f32.mrf.mxu0 }
 0x349   : > { %v2100_v5 = vpop.f32.mrf.mxu2  ;;  %v2155_v28 = vpop.f32.mrf.mxu3 }
 0x34a   : > { %2476 = vrcp.f32 %v2100_v5  ;;  %v1986_v54 = vpop.f32.mrf.mxu0  ;;  %v2041_v26 = vpop.f32.mrf.mxu1 }
 0x34b   : > { %2478 = vrcp.f32 %v1986_v54 }
 0x350   : > { %v2477_v11 = vpop.eup %2476 }
 0x351   : > { %v2479_v15 = vpop.eup %2478  ;;  %v2166_v53 = vmul.f32 %v2477_v11, %v2100_v5  ;;  %v2157_v51 = vpop.f32.mrf.mxu3 }
 0x352   : > { %v2164_v62 = vmul.f32 %v2479_v15, %v1986_v54  ;;  %2480 = vrcp.f32 %v2157_v51  ;;  %v2043_v32 = vpop.f32.mrf.mxu1 }
 0x353   : > { %v2170_v22 = vsub.f32 2.0, %v2166_v53  ;;  %2482 = vrcp.f32 %v2043_v32 }
 0x354   : > { %v2168_v20 = vsub.f32 2.0, %v2164_v62 }
 0x355   : > { %v2174_v49 = vmul.f32 %v2477_v11, %v2170_v22 }
 0x356   : > { %v2172_v56 = vmul.f32 %v2479_v15, %v2168_v20 }
 0x357   : > { %v2178_v45 = vperm.slane %v2174_v49, 0 }
 0x358   : > { %v2481_v33 = vpop.eup %2480  ;;  %v2176_v25 = vperm.slane %v2172_v56, 0 }
 0x359   : > { %v2483_v1 = vpop.eup %2482  ;;  %v2182_v14 = vmul.f32 %v2178_v45, %v2098_v7  ;;  %v2167_v43 = vmul.f32 %v2481_v33, %v2157_v51 }
 0x35a   : > { %v2180_v17 = vmul.f32 %v2176_v25, %v1984_v0  ;;  %v2165_v3 = vmul.f32 %v2483_v1, %v2043_v32 }
 0x35b   : > { %2186 = vst [vmem:[%s311_s17 + $0x10] sm:$0xff] %v2182_v14  ;;  %v2171_v35 = vsub.f32 2.0, %v2167_v43 }
 0x35c   : > { %2184 = vst [vmem:[%s311_s17] sm:$0xff] %v2180_v17  ;;  %v2169_v36 = vsub.f32 2.0, %v2165_v3 }
 0x35d   : > { %v2175_v40 = vmul.f32 %v2481_v33, %v2171_v35 }
 0x35e   : > { %v2173_v16 = vmul.f32 %v2483_v1, %v2169_v36 }
 0x35f   : > { %v2179_v58 = vperm.slane %v2175_v40, 0 }
 0x360   : > { %v2177_v18 = vperm.slane %v2173_v16, 0 }
 0x361   : > { %v2183_v19 = vmul.f32 %v2179_v58, %v2155_v28 }
 0x362   : > { %v2181_v47 = vmul.f32 %v2177_v18, %v2041_v26 }
 0x363   : > { %2187 = vst [vmem:[%s311_s17 + $0x18] sm:$0xff] %v2183_v19 }
 0x364   : > { %2185 = vst [vmem:[%s311_s17 + $0x8] sm:$0xff] %v2181_v47 }
 0x365   : > { %2515 = shalt.err (!%p2512_p3)
}
 0x366   : > { %s2553_s9 = smov 128   ;;  %s2554_s14 = smov 8  }
 0x367   : > { %2355 = dma.vmem_to_hbm [thread:$0]  (%p2628_p5), %s2202_s15, 512, %s2204_s16, %s2189_s25, %s2553_s9, %s2553_s9, %s2554_s14  }
 0x368 PF: > { %p2361_p4 = scmp.ge.s32.totalorder %s2550_s24, 2  ;;  %s2218_s17 = sand.u32 1, %s2538_s21  }
 0x369   : > { %s2219_s12 = scalar_lea.sflag [#allocation3], %s2218_s17 }
 0x36a   : > { %p2358_p7 = pnand %p2361_p4, %p2632_p6 }
 0x36c   : > { %p2359_p8 = pneg %p2358_p7 }
 0x36e   : > { %2533 = dma.done.wait (%p2359_p8), %s2219_s12, 512  }
 0x36f   : > { %2535 = vsyncadd (%p2359_p8), %s2219_s12, 4294966784  ;;  %p16_p9 = scmp.ge.s32.totalorder %s2615_s27, 4   ;;  %s3321_s21 = smov %s2542_s22 }
 0x370   : > { %s3322_s22 = smov %s2546_s23  ;;  %s3323_s23 = smov %s2626_s30 }
 0x371   : > { %s3324_s24 = smov %s2615_s27  ;;  %18 = sbr.rel (!%p16_p9) target bundleno = 3 (0x3), region = 91 }
 0x376   :  { %2225 = vsyncpa [#allocation3], 1 }
 0x377   :  { %2227 = vsyncpa [#allocation3 + $0x1], 1 }

</bundles_post_ra>
